<compile_context>
chip_gen: v5e
topology: v5e:2x2
jax: 0.10.0
libtpu: 0.0.40
codegen_flags: <defaults>
</compile_context>

<pallas_src>
import math

import jax
import jax.numpy as jnp
from jax.experimental import pallas as pl
from jax.experimental.pallas import tpu as pltpu


def _equi_output_kernel(x_ref, v_ref, w1t_ref, w2_ref, wu1x_ref, wu1v_ref,
                        bu1_ref, wu2v_ref, bu2v_ref, out_ref):
    """Per grid step:
        x_ref    : (tm, H)    scalar node features
        v_ref    : (tm, 3H)   vector node features, spatial slabs concatenated on lanes
        w1t_ref  : (H, H)     vec1_proj.weight^T
        w2_ref   : (1, H)     vec2_proj.weight (row)
        wu1x_ref : (H, H)     update_net[0].weight^T, rows for the x half
        wu1v_ref : (H, H)     update_net[0].weight^T, rows for the vec1 half
        bu1_ref  : (1, H)     update_net[0].bias
        wu2v_ref : (1, H)     update_net[2].weight row producing the vector gate
        bu2v_ref : (1, 1)     update_net[2].bias element for the vector gate
        out_ref  : (tm, 3)    gated vector output
    """
    f32 = jnp.float32
    H = x_ref.shape[1]

    x = x_ref[...]                        # (tm, H)
    w1t = w1t_ref[...]                    # (H, H)
    w2 = w2_ref[...]                      # (1, H)

    # vec1 = || vec1_proj(v) || over spatial; vec2_s = <v_s, w2> per spatial component.
    sq_acc = None
    vec2_cols = []
    for s in range(3):                    # static unroll over the 3 spatial components
        v_s = v_ref[:, s * H:(s + 1) * H]                       # lane-aligned slice (tm, H)
        p = jnp.dot(v_s, w1t, preferred_element_type=f32)       # MXU (tm, H)
        sq = p * p
        sq_acc = sq if sq_acc is None else sq_acc + sq
        # skinny out_channels=1 projection: VPU multiply + lane reduce (no N=1 matmul)
        vec2_cols.append(jnp.sum(v_s * w2, axis=-1, keepdims=True))  # (tm, 1)
    vec1 = jnp.sqrt(sq_acc)               # (tm, H)

    # update_net: Linear(2H, H) on cat([x, vec1]) as a split matmul, SiLU, then only
    # the vector-gate row of Linear(H, 2).  (The scalar branch of the block is
    # discarded by EquiOutput.forward, so it is not computed.)
    h = (jnp.dot(x, wu1x_ref[...], preferred_element_type=f32)
         + jnp.dot(vec1, wu1v_ref[...], preferred_element_type=f32)
         + bu1_ref[...])
    h = h * (1.0 / (1.0 + jnp.exp(-h)))   # SiLU
    gate = jnp.sum(h * wu2v_ref[...], axis=-1, keepdims=True) + bu2v_ref[...]  # (tm, 1)

    vec2 = jnp.concatenate(vec2_cols, axis=-1)                  # (tm, 3)
    out_ref[...] = (gate * vec2).astype(out_ref.dtype)          # single tile store


def equi_output_pallas(x, vec, params, *, tm=256):
    """x: (N, H) f32; vec: (N, 3, H) f32 -> (N, 3) f32 (== EquiOutput(H)(x, vec))."""
    W1, W2, Wu1, bu1, Wu2, bu2 = (params[k] for k in
                                  ("W1", "W2", "Wu1", "bu1", "Wu2", "bu2"))
    N, H = x.shape
    assert vec.shape == (N, 3, H)

    x = x.astype(jnp.float32)
    # Free row-major flatten (no HBM transpose): slab s lives at lanes [s*H, (s+1)*H).
    v2d = vec.reshape(N, 3 * H).astype(jnp.float32)

    # Pad the ragged node tail so every grid step is a full (tm, ...) tile.
    n_blocks = pl.cdiv(N, tm)
    Np = n_blocks * tm
    if Np != N:
        x = jnp.pad(x, ((0, Np - N), (0, 0)))
        v2d = jnp.pad(v2d, ((0, Np - N), (0, 0)))

    w1t = W1.T.astype(jnp.float32)                            # (H, H)
    w2_row = W2.reshape(1, H).astype(jnp.float32)             # (1, H)
    wu1t = Wu1.T.astype(jnp.float32)                          # (2H, H)
    wu1x, wu1v = wu1t[:H], wu1t[H:]                           # (H, H) each
    bu1_2d = bu1.reshape(1, H).astype(jnp.float32)            # (1, H)
    wu2v_row = Wu2[1].reshape(1, H).astype(jnp.float32)       # gate row only
    bu2v = bu2[1].reshape(1, 1).astype(jnp.float32)           # (1, 1)

    out = pl.pallas_call(
        _equi_output_kernel,
        out_shape=jax.ShapeDtypeStruct((Np, 3), jnp.float32),
        grid_spec=pltpu.PrefetchScalarGridSpec(
            num_scalar_prefetch=0,
            grid=(n_blocks,),
            in_specs=[
                pl.BlockSpec((tm, H), lambda i: (i, 0)),        # x tile
                pl.BlockSpec((tm, 3 * H), lambda i: (i, 0)),    # vec tile (flattened)
                pl.BlockSpec((H, H), lambda i: (0, 0)),         # W1^T   (resident)
                pl.BlockSpec((1, H), lambda i: (0, 0)),         # W2 row (resident)
                pl.BlockSpec((H, H), lambda i: (0, 0)),         # Wu1^T x-half
                pl.BlockSpec((H, H), lambda i: (0, 0)),         # Wu1^T vec1-half
                pl.BlockSpec((1, H), lambda i: (0, 0)),         # b1
                pl.BlockSpec((1, H), lambda i: (0, 0)),         # Wu2 gate row
                pl.BlockSpec((1, 1), lambda i: (0, 0)),         # b2 gate element
            ],
            out_specs=pl.BlockSpec((tm, 3), lambda i: (i, 0)),
        ),
        compiler_params=pltpu.CompilerParams(
            dimension_semantics=("parallel",)),
    )(x, v2d, w1t, w2_row, wu1x, wu1v, bu1_2d, wu2v_row, bu2v)

    return out[:N]


def equi_output_params(hidden_channels, key):
    """Weights matching the PyTorch module layout (Linear weight = (out, in))."""
    H = hidden_channels
    ks = jax.random.split(key, 6)

    def xavier(k, shape):
        fan_out, fan_in = shape
        a = math.sqrt(6.0 / (fan_in + fan_out))
        return jax.random.uniform(k, shape, jnp.float32, -a, a)

    return dict(
        W1=xavier(ks[0], (H, H)),            # vec1_proj.weight
        W2=xavier(ks[1], (1, H)),            # vec2_proj.weight
        Wu1=xavier(ks[2], (H, 2 * H)),       # update_net[0].weight
        bu1=0.1 * jax.random.normal(ks[3], (H,), jnp.float32),
        Wu2=xavier(ks[4], (2, H)),           # update_net[2].weight
        bu2=0.1 * jax.random.normal(ks[5], (2,), jnp.float32),
    )


def equi_output_ref(x, vec, params):
    """Pure-JAX reference mirroring the PyTorch forward."""
    W1, W2, Wu1, bu1, Wu2, bu2 = (params[k] for k in
                                  ("W1", "W2", "Wu1", "bu1", "Wu2", "bu2"))
    hi = jax.lax.Precision.HIGHEST
    p = jnp.einsum('nsh,oh->nso', vec, W1, precision=hi)              # vec1_proj
    vec1 = jnp.sqrt(jnp.sum(p * p, axis=1))                           # norm over spatial
    vec2 = jnp.einsum('nsh,oh->nso', vec, W2, precision=hi)[..., 0]   # (N, 3)
    xx = jnp.concatenate([x, vec1], axis=-1)
    h = jnp.dot(xx, Wu1.T, precision=hi) + bu1
    h = h * (1.0 / (1.0 + jnp.exp(-h)))                               # SiLU
    u = jnp.dot(h, Wu2.T, precision=hi) + bu2                         # (N, 2)
    gate = u[:, 1:2]                                                  # vector-gate half
    return gate * vec2                                                # == vec.squeeze()


if __name__ == "__main__":
    hidden_channels = 128
    N = 200   # deliberately not a multiple of the tile to exercise ragged padding

    key = jax.random.PRNGKey(0)
    kx, kv, kp = jax.random.split(key, 3)
    x = jax.random.normal(kx, (N, hidden_channels), jnp.float32)
    vec = jax.random.normal(kv, (N, 3, hidden_channels), jnp.float32)
    params = equi_output_params(hidden_channels, kp)

    out = equi_output_pallas(x, vec, params, tm=128)
    out = jax.block_until_ready(out)

    ref = equi_output_ref(x, vec, params)
    assert out.shape == (N, 3)
    err = float(jnp.max(jnp.abs(out - ref)))
    assert jnp.allclose(out, ref, atol=1e-2, rtol=1e-2), f"mismatch vs reference, max abs err {err}"

    print("KERNEL_OK")
</pallas_src>

<mosaic_0001>
module attributes {stable_mosaic.version = 11 : i64} {
  func.func @_equi_output_kernel(%arg0: i32, %arg1: memref<128x128xf32, #tpu.memory_space<vmem>>, %arg2: memref<128x384xf32, #tpu.memory_space<vmem>>, %arg3: memref<128x128xf32, #tpu.memory_space<vmem>>, %arg4: memref<1x128xf32, #tpu.memory_space<vmem>>, %arg5: memref<128x128xf32, #tpu.memory_space<vmem>>, %arg6: memref<128x128xf32, #tpu.memory_space<vmem>>, %arg7: memref<1x128xf32, #tpu.memory_space<vmem>>, %arg8: memref<1x128xf32, #tpu.memory_space<vmem>>, %arg9: memref<1x1xf32, #tpu.memory_space<vmem>>, %arg10: memref<128x3xf32, #tpu.memory_space<vmem>>) attributes {dimension_semantics = [#tpu.dimension_semantics<parallel>], iteration_bounds = array<i64: 2>, scalar_prefetch = 0 : i64, scratch_operands = 0 : i64, tpu.core_type = #tpu.core_type<tc>, window_params = [{transform_indices = @transform_0, window_bounds = array<i64: 128, 128>}, {transform_indices = @transform_1, window_bounds = array<i64: 128, 384>}, {pipeline_mode = #tpu.pipeline_mode<synchronous>, transform_indices = @transform_2, window_bounds = array<i64: 128, 128>}, {pipeline_mode = #tpu.pipeline_mode<synchronous>, transform_indices = @transform_3, window_bounds = array<i64: 1, 128>}, {pipeline_mode = #tpu.pipeline_mode<synchronous>, transform_indices = @transform_4, window_bounds = array<i64: 128, 128>}, {pipeline_mode = #tpu.pipeline_mode<synchronous>, transform_indices = @transform_5, window_bounds = array<i64: 128, 128>}, {pipeline_mode = #tpu.pipeline_mode<synchronous>, transform_indices = @transform_6, window_bounds = array<i64: 1, 128>}, {pipeline_mode = #tpu.pipeline_mode<synchronous>, transform_indices = @transform_7, window_bounds = array<i64: 1, 128>}, {pipeline_mode = #tpu.pipeline_mode<synchronous>, transform_indices = @transform_8, window_bounds = array<i64: 1, 1>}, {transform_indices = @transform_9, window_bounds = array<i64: 128, 3>}]} {
    %c0 = arith.constant 0 : index
    %c0_0 = arith.constant 0 : index
    %0 = vector.load %arg1[%c0, %c0_0] : memref<128x128xf32, #tpu.memory_space<vmem>>, vector<128x128xf32>
    %c0_1 = arith.constant 0 : index
    %c0_2 = arith.constant 0 : index
    %1 = vector.load %arg3[%c0_1, %c0_2] : memref<128x128xf32, #tpu.memory_space<vmem>>, vector<128x128xf32>
    %c0_3 = arith.constant 0 : index
    %c0_4 = arith.constant 0 : index
    %2 = vector.load %arg4[%c0_3, %c0_4] : memref<1x128xf32, #tpu.memory_space<vmem>>, vector<1x128xf32>
    %c0_5 = arith.constant 0 : index
    %c0_6 = arith.constant 0 : index
    %3 = vector.load %arg2[%c0_5, %c0_6] : memref<128x384xf32, #tpu.memory_space<vmem>>, vector<128x128xf32>
    %cst = arith.constant dense<0.000000e+00> : vector<128x128xf32>
    %4 = tpu.matmul %3, %1, %cst {dimension_numbers = #tpu.dot_dimension_numbers<[1], [0], [0], [1], [0, 0, 1, 1], [], []>} : vector<128x128xf32>, vector<128x128xf32>, vector<128x128xf32> -> vector<128x128xf32>
    %5 = arith.mulf %4, %4 : vector<128x128xf32>
    %6 = vector.broadcast %2 : vector<1x128xf32> to vector<128x128xf32>
    %7 = arith.mulf %3, %6 : vector<128x128xf32>
    %cst_7 = arith.constant dense<0.000000e+00> : vector<128xf32>
    %8 = vector.multi_reduction <add>, %7, %cst_7 [1] : vector<128x128xf32> to vector<128xf32>
    %9 = vector.shape_cast %8 : vector<128xf32> to vector<128x1xf32>
    %c0_8 = arith.constant 0 : index
    %c128 = arith.constant 128 : index
    %10 = vector.load %arg2[%c0_8, %c128] : memref<128x384xf32, #tpu.memory_space<vmem>>, vector<128x128xf32>
    %cst_9 = arith.constant dense<0.000000e+00> : vector<128x128xf32>
    %11 = tpu.matmul %10, %1, %cst_9 {dimension_numbers = #tpu.dot_dimension_numbers<[1], [0], [0], [1], [0, 0, 1, 1], [], []>} : vector<128x128xf32>, vector<128x128xf32>, vector<128x128xf32> -> vector<128x128xf32>
    %12 = arith.mulf %11, %11 : vector<128x128xf32>
    %13 = arith.addf %5, %12 : vector<128x128xf32>
    %14 = vector.broadcast %2 : vector<1x128xf32> to vector<128x128xf32>
    %15 = arith.mulf %10, %14 : vector<128x128xf32>
    %cst_10 = arith.constant dense<0.000000e+00> : vector<128xf32>
    %16 = vector.multi_reduction <add>, %15, %cst_10 [1] : vector<128x128xf32> to vector<128xf32>
    %17 = vector.shape_cast %16 : vector<128xf32> to vector<128x1xf32>
    %c0_11 = arith.constant 0 : index
    %c256 = arith.constant 256 : index
    %18 = vector.load %arg2[%c0_11, %c256] : memref<128x384xf32, #tpu.memory_space<vmem>>, vector<128x128xf32>
    %cst_12 = arith.constant dense<0.000000e+00> : vector<128x128xf32>
    %19 = tpu.matmul %18, %1, %cst_12 {dimension_numbers = #tpu.dot_dimension_numbers<[1], [0], [0], [1], [0, 0, 1, 1], [], []>} : vector<128x128xf32>, vector<128x128xf32>, vector<128x128xf32> -> vector<128x128xf32>
    %20 = arith.mulf %19, %19 : vector<128x128xf32>
    %21 = arith.addf %13, %20 : vector<128x128xf32>
    %22 = vector.broadcast %2 : vector<1x128xf32> to vector<128x128xf32>
    %23 = arith.mulf %18, %22 : vector<128x128xf32>
    %cst_13 = arith.constant dense<0.000000e+00> : vector<128xf32>
    %24 = vector.multi_reduction <add>, %23, %cst_13 [1] : vector<128x128xf32> to vector<128xf32>
    %25 = vector.shape_cast %24 : vector<128xf32> to vector<128x1xf32>
    %26 = math.sqrt %21 : vector<128x128xf32>
    %c0_14 = arith.constant 0 : index
    %c0_15 = arith.constant 0 : index
    %27 = vector.load %arg5[%c0_14, %c0_15] : memref<128x128xf32, #tpu.memory_space<vmem>>, vector<128x128xf32>
    %cst_16 = arith.constant dense<0.000000e+00> : vector<128x128xf32>
    %28 = tpu.matmul %0, %27, %cst_16 {dimension_numbers = #tpu.dot_dimension_numbers<[1], [0], [0], [1], [0, 0, 1, 1], [], []>} : vector<128x128xf32>, vector<128x128xf32>, vector<128x128xf32> -> vector<128x128xf32>
    %c0_17 = arith.constant 0 : index
    %c0_18 = arith.constant 0 : index
    %29 = vector.load %arg6[%c0_17, %c0_18] : memref<128x128xf32, #tpu.memory_space<vmem>>, vector<128x128xf32>
    %cst_19 = arith.constant dense<0.000000e+00> : vector<128x128xf32>
    %30 = tpu.matmul %26, %29, %cst_19 {dimension_numbers = #tpu.dot_dimension_numbers<[1], [0], [0], [1], [0, 0, 1, 1], [], []>} : vector<128x128xf32>, vector<128x128xf32>, vector<128x128xf32> -> vector<128x128xf32>
    %31 = arith.addf %28, %30 : vector<128x128xf32>
    %c0_20 = arith.constant 0 : index
    %c0_21 = arith.constant 0 : index
    %32 = vector.load %arg7[%c0_20, %c0_21] : memref<1x128xf32, #tpu.memory_space<vmem>>, vector<1x128xf32>
    %33 = vector.broadcast %32 : vector<1x128xf32> to vector<128x128xf32>
    %34 = arith.addf %31, %33 : vector<128x128xf32>
    %cst_22 = arith.constant 0.000000e+00 : f32
    %35 = vector.broadcast %cst_22 : f32 to vector<128x128xf32>
    %36 = arith.subf %35, %34 : vector<128x128xf32>
    %37 = math.exp %36 : vector<128x128xf32>
    %cst_23 = arith.constant 1.000000e+00 : f32
    %38 = vector.broadcast %cst_23 : f32 to vector<128x128xf32>
    %39 = arith.addf %38, %37 : vector<128x128xf32>
    %cst_24 = arith.constant 1.000000e+00 : f32
    %40 = vector.broadcast %cst_24 : f32 to vector<128x128xf32>
    %41 = arith.divf %40, %39 : vector<128x128xf32>
    %42 = arith.mulf %34, %41 : vector<128x128xf32>
    %c0_25 = arith.constant 0 : index
    %c0_26 = arith.constant 0 : index
    %43 = vector.load %arg8[%c0_25, %c0_26] : memref<1x128xf32, #tpu.memory_space<vmem>>, vector<1x128xf32>
    %44 = vector.broadcast %43 : vector<1x128xf32> to vector<128x128xf32>
    %45 = arith.mulf %42, %44 : vector<128x128xf32>
    %cst_27 = arith.constant dense<0.000000e+00> : vector<128xf32>
    %46 = vector.multi_reduction <add>, %45, %cst_27 [1] : vector<128x128xf32> to vector<128xf32>
    %47 = vector.shape_cast %46 : vector<128xf32> to vector<128x1xf32>
    %c0_28 = arith.constant 0 : index
    %c0_29 = arith.constant 0 : index
    %48 = vector.load %arg9[%c0_28, %c0_29] : memref<1x1xf32, #tpu.memory_space<vmem>>, vector<1x1xf32>
    %49 = vector.broadcast %48 : vector<1x1xf32> to vector<128x1xf32>
    %50 = arith.addf %47, %49 : vector<128x1xf32>
    %51 = tpu.concatenate %9, %17, %25 in 1 : vector<128x1xf32>, vector<128x1xf32>, vector<128x1xf32> -> vector<128x3xf32>
    %52 = vector.broadcast %50 : vector<128x1xf32> to vector<128x3xf32>
    %53 = arith.mulf %52, %51 : vector<128x3xf32>
    %c0_30 = arith.constant 0 : index
    %c0_31 = arith.constant 0 : index
    %54 = vector.load %arg10[%c0_30, %c0_31] : memref<128x3xf32, #tpu.memory_space<vmem>>, vector<128x3xf32>
    tpu.vector_store %arg10[%c0_30, %c0_31], %53 {strides = array<i32>} : memref<128x3xf32, #tpu.memory_space<vmem>>, vector<128x3xf32>,
    return
  }
  func.func @transform_0(%arg0: i32) -> (i32, i32) {
    %c0_i32 = arith.constant 0 : i32
    %c0_i32_0 = arith.constant 0 : i32
    return %arg0, %c0_i32 : i32, i32
  }
  func.func @transform_1(%arg0: i32) -> (i32, i32) {
    %c0_i32 = arith.constant 0 : i32
    %c0_i32_0 = arith.constant 0 : i32
    return %arg0, %c0_i32 : i32, i32
  }
  func.func @transform_2(%arg0: i32) -> (i32, i32) {
    %c0_i32 = arith.constant 0 : i32
    %c0_i32_0 = arith.constant 0 : i32
    %c0_i32_1 = arith.constant 0 : i32
    return %c0_i32, %c0_i32_0 : i32, i32
  }
  func.func @transform_3(%arg0: i32) -> (i32, i32) {
    %c0_i32 = arith.constant 0 : i32
    %c0_i32_0 = arith.constant 0 : i32
    %c0_i32_1 = arith.constant 0 : i32
    return %c0_i32, %c0_i32_0 : i32, i32
  }
  func.func @transform_4(%arg0: i32) -> (i32, i32) {
    %c0_i32 = arith.constant 0 : i32
    %c0_i32_0 = arith.constant 0 : i32
    %c0_i32_1 = arith.constant 0 : i32
    return %c0_i32, %c0_i32_0 : i32, i32
  }
  func.func @transform_5(%arg0: i32) -> (i32, i32) {
    %c0_i32 = arith.constant 0 : i32
    %c0_i32_0 = arith.constant 0 : i32
    %c0_i32_1 = arith.constant 0 : i32
    return %c0_i32, %c0_i32_0 : i32, i32
  }
  func.func @transform_6(%arg0: i32) -> (i32, i32) {
    %c0_i32 = arith.constant 0 : i32
    %c0_i32_0 = arith.constant 0 : i32
    %c0_i32_1 = arith.constant 0 : i32
    return %c0_i32, %c0_i32_0 : i32, i32
  }
  func.func @transform_7(%arg0: i32) -> (i32, i32) {
    %c0_i32 = arith.constant 0 : i32
    %c0_i32_0 = arith.constant 0 : i32
    %c0_i32_1 = arith.constant 0 : i32
    return %c0_i32, %c0_i32_0 : i32, i32
  }
  func.func @transform_8(%arg0: i32) -> (i32, i32) {
    %c0_i32 = arith.constant 0 : i32
    %c0_i32_0 = arith.constant 0 : i32
    %c0_i32_1 = arith.constant 0 : i32
    return %c0_i32, %c0_i32_0 : i32, i32
  }
  func.func @transform_9(%arg0: i32) -> (i32, i32) {
    %c0_i32 = arith.constant 0 : i32
    %c0_i32_0 = arith.constant 0 : i32
    return %arg0, %c0_i32 : i32, i32
  }
}

</mosaic_0001>

<bundles_post_ra>
// kernel: tpu_custom_call.1
= control target key start
LH: loop header
LB: loop body
LE: loop exit
PB: predicated region body
PF: predicated region fallthrough
CT: control target
= control target key end

     0   :  { %s3646_s0 = inlined_call_operand.hbm [shape: f32[256,128], index: 0, kind: input, shape index: {}]   ;;  %s3647_s1 = inlined_call_operand.hbm [shape: f32[256,384], index: 1, kind: input, shape index: {}]   ;;  %s3648_s2 = inlined_call_operand.hbm [shape: f32[128,128], index: 2, kind: input, shape index: {}]   ;;  %s3649_s3 = inlined_call_operand.vmem [shape: f32[1,128], index: 3, kind: input, shape index: {}]   ;;  %s3650_s4 = inlined_call_operand.hbm [shape: f32[128,128], index: 4, kind: input, shape index: {}]   ;;  %s3651_s5 = inlined_call_operand.hbm [shape: f32[128,128], index: 5, kind: input, shape index: {}]   ;;  %s3652_s6 = inlined_call_operand.vmem [shape: f32[1,128], index: 6, kind: input, shape index: {}]   ;;  %s3653_s7 = inlined_call_operand.vmem [shape: f32[1,128], index: 7, kind: input, shape index: {}]   ;;  %s3654_s8 = inlined_call_operand.<no memory space> [shape: f32[1,1], index: 8, kind: input, shape index: {}]   ;;  %s3655_s9 = inlined_call_operand.vmem [shape: f32[256,3], index: 9, kind: output, shape index: {}]  }
   0x1   :  { %3658 = sst [smem:[#allocation16_spill]] %s3648_s2  ;;  %v14_v0 = vstv %s3654_s8 }
   0x2   :  { %3659 = sst [smem:[#allocation17_spill]] %s3650_s4  ;;  %15 = vst [vmem:[#allocation2] sm:$0x1] %v14_v0 }
   0x3   :  { %3660 = sst [smem:[#allocation18_spill]] %s3651_s5 }
   0x4   :  { %16 = vsyncpa [#allocation4], 0 }
   0x5   :  { %18 = vsyncpa [#allocation4 + $0x1], 0 }
   0x6   :  { %19 = vsyncpa [#allocation6], 0 }
   0x7   :  { %21 = vsyncpa [#allocation6 + $0x1], 0 }
   0x8   :  { %22 = vsyncpa [#allocation9], 0  ;;  %s2517_s11 = smov 0   ;;  %s2519_s12 = smov 0  }
   0x9   :  { %s2521_s13 = smov 0   ;;  %s2523_s14 = smov 0  }
   0xa LB: > { %s2536_s8 = sadd.s32 4294967295, %s2454_s14   ;;  %p48_p0 = scmp.ne.s32.totalorder %s2446_s12, %s2442_s11  ;;  %s2454_s14 = sphi %s2523_s14, %s3675_s14   ;;  %s2450_s13 = sphi %s2521_s13, %s3674_s13   ;;  %s2446_s12 = sphi %s2519_s12, %s3673_s12   ;;  %s2442_s11 = sphi %s2517_s11, %s3672_s11  }
   0xb   : > { %p49_p1 = scmp.eq.s32.totalorder %s2536_s8, 0  ;;  %p1988_p2 = scmp.ge.s32.totalorder %s2454_s14, 1 }
   0xc   : > { %p258_p3 = scmp.lt.s32.totalorder %s2454_s14, 3  ;;  %s3662_s2 = sld [smem:[#allocation16_spill]] }
   0xd   : > { %p2544_p4 = por %p49_p1, %p48_p0  ;;  %s2456_s20 = smov [#allocation7]  }
   0xe   : > { %p2551_p5 = pnand %p1988_p2, %p258_p3  ;;  %s271_s21 = sshll.u32 %s2456_s20, 4  ;;  %s272_s21 = int_to_ptr.vmem [resolvable:$true] %s271_s21 }
   0xf   : > { %s3665_s4 = sld [smem:[#allocation17_spill]]  ;;  %s3656_s26 = smov 128  }
  0x10   : > { %p2076_p6 = pneg %p2551_p5  ;;  %s3657_s27 = smov 8  }
  0x11   : > { %s2459_s28 = smov [#allocation8]   ;;  %s3666_s5 = sld [smem:[#allocation18_spill]] }
  0x12   : > { %s269_s18 = sshll.u32 %s3662_s2, 4  ;;  %p2559_p7 = pnand %p2076_p6, %p49_p1  ;;  %s270_s18 = int_to_ptr.hbm [resolvable:$true] %s269_s18 }
  0x13   : > { %s288_s29 = sshll.u32 %s2459_s28, 4  ;;  %s2460_s16 = smov [#allocation10]   ;;  %s289_s29 = int_to_ptr.vmem [resolvable:$true] %s288_s29 }
  0x14   : > { %2079 = dma.hbm_to_vmem [thread:$0]  (!%p2559_p7), %s270_s18, 2048, %s272_s21, [#allocation6], %s3656_s26, %s3656_s26, %s3657_s27  }
  0x15   : > { %s286_s25 = sshll.u32 %s3665_s4, 4  ;;  %s302_s17 = sshll.u32 %s2460_s16, 4  ;;  %s287_s25 = int_to_ptr.hbm [resolvable:$true] %s286_s25  ;;  %s303_s17 = int_to_ptr.vmem [resolvable:$true] %s302_s17 }
  0x16   : > { %2082 = dma.hbm_to_vmem [thread:$0]  (!%p2559_p7), %s287_s25, 2048, %s289_s29, [#allocation9], %s3656_s26, %s3656_s26, %s3657_s27  }
  0x17   : > { %s300_s11 = sshll.u32 %s3666_s5, 4  ;;  %s2580_s18 = sadd.s32 1, %s2454_s14   ;;  %s301_s11 = int_to_ptr.hbm [resolvable:$true] %s300_s11 }
  0x18   : > { %2085 = dma.hbm_to_vmem [thread:$0]  (!%p2559_p7), %s301_s11, 2048, %s303_s17, [#allocation9], %s3656_s26, %s3656_s26, %s3657_s27  }
  0x19   : > { %s32_s20 = ssub.s32 %s2454_s14, %s2580_s18  ;;  %s35_s21 = sadd.s32 1, %s2450_s13 }
  0x1a   : > { %p33_p8 = scmp.eq.s32.totalorder %s32_s20, 0  ;;  %p42_p9 = scmp.ne.s32.totalorder %s2450_s13, %s2446_s12 }
  0x1b   : > { %p43_p10 = scmp.eq.s32.totalorder %s2454_s14, 0  ;;  %p2096_p11 = scmp.lt.s32.totalorder %s2454_s14, 2 }
  0x1c   : > { %s2595_s23 = scalar_select %p33_p8, %s2450_s13, %s35_s21  }
  0x1d   : > { %p44_p12 = por %p43_p10, %p42_p9  ;;  %s2598_s24 = sand.u32 1, %s2450_s13  }
  0x1e   : > { %3667 = sst [smem:[#allocation15_spill]] %s2595_s23  ;;  %s1993_s22 = sshll.u32 %s2598_s24, 7 }
  0x1f   : > { %s2008_s25 = sshll.u32 %s2454_s14, 7  ;;  %s329_s10 = scalar_lea.vmem [#allocation3], %s1993_s22 }
  0x20   : > { %s334_s30 = scalar_lea.hbm %s3646_s0, %s2008_s25  ;;  %s337_s11 = sshll.u32 %s329_s10, 4  ;;  %s338_s11 = int_to_ptr.vmem [resolvable:$true] %s337_s11 }
  0x21   : > { %s335_s16 = sshll.u32 %s334_s30, 4  ;;  %p2605_p13 = pnand %p2096_p11, %p44_p12  ;;  %s336_s16 = int_to_ptr.hbm [resolvable:$true] %s335_s16 }
  0x22   : > { %s347_s20 = sand.u32 1, %s2454_s14   ;;  %s2057_s21 = smul.u32 384, %s2598_s24 }
  0x23   : > { %s326_s26 = scalar_lea.sflag [#allocation4], %s2598_s24  ;;  %s2348_s27 = sshra.s32 %s336_s16, 4  ;;  %s2349_s27 = int_to_ptr.hbm [resolvable:$true] %s2348_s27 }
  0x24   : > { %s2350_s2 = scalar_lea.hbm %s2349_s27, 128  ;;  %p2352_p2 = pneg %p2605_p13 }
  0x25   : > { %p2351_p0 = scmp.ne.s32.totalorder %s2349_s27, %s2350_s2  ;;  %s2355_s28 = scalar_lea.hbm %s3646_s0, 256 }
  0x26   : > { %p2356_p7 = scmp.lt.s32.totalorder %s2349_s27, %s3646_s0  ;;  %p2357_p8 = scmp.lt.s32.totalorder %s2355_s28, %s2350_s2 }
  0x27   : > { %p2353_p3 = pnand %p2352_p2, %p2351_p0 }
  0x28   : > { %p2358_p9 = por %p2357_p8, %p2356_p7 }
  0x29   : > { %p2354_p6 = pneg %p2353_p3 }
  0x2b   : > { %p2359_p10 = pnand %p2358_p9, %p2354_p6 }
  0x2d   : > { %2362 = shalt.err (!%p2359_p10)
}
  0x2e   : > { %s3669_s24 = smov 8   ;;  %s3670_s10 = smov 128  }
  0x2f   : > { %2089 = dma.hbm_to_vmem [thread:$0]  (!%p2605_p13), %s336_s16, 2048, %s338_s11, %s326_s26, %s3670_s10, %s3670_s10, %s3669_s24  }
  0x30   : > { %s2058_s4 = smul.u32 384, %s2454_s14  ;;  %s351_s5 = scalar_lea.vmem [#allocation5], %s2057_s21 }
  0x31   : > { %s360_s22 = sshll.u32 %s351_s5, 4  ;;  %s348_s27 = scalar_lea.sflag [#allocation6], %s347_s20  ;;  %s361_s22 = int_to_ptr.vmem [resolvable:$true] %s360_s22 }
  0x32   : > { %s357_s29 = scalar_lea.hbm %s3647_s1, %s2058_s4  ;;  %s2385_s5 = scalar_lea.hbm %s3647_s1, 768 }
  0x33   : > { %s358_s2 = sshll.u32 %s357_s29, 4  ;;  %s359_s2 = int_to_ptr.hbm [resolvable:$true] %s358_s2 }
  0x34   : > { %s2378_s28 = sshra.s32 %s359_s2, 4  ;;  %s2379_s28 = int_to_ptr.hbm [resolvable:$true] %s2378_s28 }
  0x35   : > { %s2380_s30 = scalar_lea.hbm %s2379_s28, 384  ;;  %p2386_p3 = scmp.lt.s32.totalorder %s2379_s28, %s3647_s1 }
  0x36   : > { %p2381_p11 = scmp.ne.s32.totalorder %s2379_s28, %s2380_s30  ;;  %p2387_p6 = scmp.lt.s32.totalorder %s2385_s5, %s2380_s30 }
  0x38   : > { %p2383_p12 = pnand %p2381_p11, %p2352_p2  ;;  %p2388_p7 = por %p2387_p6, %p2386_p3 }
  0x3a   : > { %p2384_p0 = pneg %p2383_p12 }
  0x3c   : > { %p2389_p8 = pnand %p2388_p7, %p2384_p0 }
  0x3e   : > { %2392 = shalt.err (!%p2389_p8)
}
  0x3f   : > { %s2461_s4 = smov 384   ;;  %s2462_s23 = smov 24  }
  0x40   : > { %2092 = dma.hbm_to_vmem [thread:$0]  (!%p2605_p13), %s359_s2, 6144, %s361_s22, %s348_s27, %s2461_s4, %s2461_s4, %s2462_s23  }
  0x41   : > { %372 = sbr.rel (%p2551_p5) target bundleno = 826 (0x33a), region = 56  ;;  %s374_s20 = sand.u32 (!%p2551_p5), 1, %s2446_s12  }
  0x42   : > { %s2000_s21 = sshll.u32 (!%p2551_p5), %s374_s20, 7  ;;  %s375_s24 = scalar_lea.sflag (!%p2551_p5), [#allocation4], %s374_s20 }
  0x43   : > { %s2646_s10 = scalar_lea.vmem (!%p2551_p5), [#allocation3], %s2000_s21 }
  0x46   : > { %2425 = dma.done.wait (%p2544_p4), %s375_s24, 2048  }
  0x47   : > { %2427 = vsyncadd (%p2544_p4), %s375_s24, 4294965248  ;;  %s384_s25 = sand.u32 1, %s2536_s8   ;;  %s2059_s17 = smul.u32 384, %s374_s20 }
  0x48   : > { %s385_s22 = scalar_lea.sflag [#allocation6], %s384_s25 }
  0x49   : > { %s2653_s29 = scalar_lea.vmem [#allocation5], %s2059_s17 }
  0x4a   : > { %2429 = dma.done.wait (%p2544_p4), %s385_s22, 6144  }
  0x4b   : > { %2431 = vsyncadd (%p2544_p4), %s385_s22, 4294961152 }
  0x4c   : > { %2433 = dma.done.wait (%p49_p1), [#allocation6], 2048  }
  0x4d   : > { %2435 = vsyncadd (%p49_p1), [#allocation6], 4294965248 }
  0x4e   : > { %2437 = dma.done.wait (%p49_p1), [#allocation9], 4096  }
  0x4f   : > { %2439 = vsyncadd (%p49_p1), [#allocation9], 4294963200  ;;  %v2667_v1 = vld [vmem:[#allocation7 + $0x78] sm:$0xff]  ;;  %v2669_v2 = vld [vmem:[#allocation7 + $0x70] sm:$0xff]  ;;  %s2004_s26 = sshll.u32 %s2536_s8, 4 }
  0x50   : > { %2009 = vmatpush.msra.mxu1 %v2667_v1  ;;  %2010 = vmatpush.msra.mxu2 %v2667_v1  ;;  %v2673_v3 = vld [vmem:[#allocation7 + $0x68] sm:$0xff]  ;;  %v2679_v4 = vld [vmem:[#allocation7 + $0x60] sm:$0xff]  ;;  %v2685_v5 = vld [vmem:[#allocation7 + $0x58] sm:$0xff]  ;;  %p447_p1 = scmp.lt.s32.totalorder %s2004_s26, 31 }
  0x51   : > { %501 = vmatpush.msra.mxu0 %v2667_v1  ;;  %2011 = vmatpush.msra.mxu3 %v2667_v1  ;;  %v2691_v6 = vld [vmem:[#allocation7 + $0x50] sm:$0xff]  ;;  %v2697_v7 = vld [vmem:[#allocation7 + $0x48] sm:$0xff]  ;;  %v2703_v8 = vld [vmem:[#allocation7 + $0x40] sm:$0xff] }
  0x52   : > { %2012 = vmatpush.msra.mxu1 %v2669_v2  ;;  %2013 = vmatpush.msra.mxu2 %v2669_v2  ;;  %v2709_v9 = vld [vmem:[#allocation7 + $0x38] sm:$0xff]  ;;  %v2715_v10 = vld [vmem:[#allocation7 + $0x30] sm:$0xff]  ;;  %v2721_v11 = vld [vmem:[#allocation7 + $0x28] sm:$0xff]  ;;  %s3677_s26 = smov (!%p447_p1, %s2004_s26), 31 }
  0x53   : > { %502 = vmatpush.msra.mxu0 %v2669_v2  ;;  %2014 = vmatpush.msra.mxu3 %v2669_v2  ;;  %v2727_v12 = vld [vmem:[#allocation7 + $0x20] sm:$0xff]  ;;  %v2733_v13 = vld [vmem:[#allocation7 + $0x18] sm:$0xff]  ;;  %v2739_v14 = vld [vmem:[#allocation7 + $0x10] sm:$0xff]  ;;  %s2005_s14 = sshll.u32 %s3677_s26, 3 }
  0x54   : > { %2015 = vmatpush.msra.mxu1 %v2673_v3  ;;  %2016 = vmatpush.msra.mxu2 %v2673_v3  ;;  %v2745_v15 = vld [vmem:[#allocation7 + $0x8] sm:$0xff]  ;;  %v2751_v16 = vld [vmem:[#allocation7] sm:$0xff]  ;;  %v2782_v20 = vld [vmem:[%s2653_s29 + $0x78] sm:$0xff]  ;;  %s3583_s16 = scalar_lea.vmem %s3655_s9, %s2005_s14 }
  0x55   : > { %503 = vmatpush.msra.mxu0 %v2673_v3  ;;  %2017 = vmatpush.msra.mxu3 %v2673_v3  ;;  %v2758_v17 = vld [vmem:[%s2653_s29 + $0x60] sm:$0xff]  ;;  %v2785_v21 = vld [vmem:[%s2653_s29 + $0xd8] sm:$0xff]  ;;  %v2802_v23 = vld [vmem:[%s2653_s29 + $0x90] sm:$0xff] }
  0x56   : > { %2018 = vmatpush.msra.mxu1 %v2679_v4  ;;  %2019 = vmatpush.msra.mxu2 %v2679_v4  ;;  %v2761_v18 = vld [vmem:[%s2653_s29 + $0xc0] sm:$0xff]  ;;  %v2794_v22 = vld [vmem:[%s2653_s29 + $0x18] sm:$0xff]  ;;  %v2805_v24 = vld [vmem:[%s2653_s29 + $0xf0] sm:$0xff] }
  0x57   : > { %504 = vmatpush.msra.mxu0 %v2679_v4  ;;  %2020 = vmatpush.msra.mxu3 %v2679_v4  ;;  %v2772_v19 = vld [vmem:[%s2653_s29] sm:$0xff]  ;;  %v2814_v25 = vld [vmem:[%s2653_s29 + $0x30] sm:$0xff]  ;;  %v2822_v26 = vld [vmem:[%s2653_s29 + $0xa8] sm:$0xff] }
  0x58   : > { %2021 = vmatpush.msra.mxu1 %v2685_v5  ;;  %2022 = vmatpush.msra.mxu2 %v2685_v5  ;;  %v2825_v27 = vld [vmem:[%s2653_s29 + $0x108] sm:$0xff]  ;;  %v794_v30 = vld [vmem:[%s2653_s29 + $0x10] sm:$0xff]  ;;  %v2849_v31 = vld [vmem:[%s2653_s29 + $0x20] sm:$0xff] }
  0x59   : > { %505 = vmatpush.msra.mxu0 %v2685_v5  ;;  %2023 = vmatpush.msra.mxu3 %v2685_v5  ;;  %v2834_v28 = vld [vmem:[%s2653_s29 + $0x48] sm:$0xff]  ;;  %v2854_v33 = vld [vmem:[%s2653_s29 + $0x38] sm:$0xff]  ;;  %v796_v34 = vld [vmem:[%s2653_s29 + $0x40] sm:$0xff] }
  0x5a   : > { %2024 = vmatpush.msra.mxu1 %v2691_v6  ;;  %2025 = vmatpush.msra.mxu2 %v2691_v6  ;;  %v2842_v29 = vld [vmem:[%s2653_s29 + $0x8] sm:$0xff]  ;;  %v2859_v35 = vld [vmem:[%s2653_s29 + $0x50] sm:$0xff]  ;;  %v797_v36 = vld [vmem:[%s2653_s29 + $0x58] sm:$0xff] }
  0x5b   : > { %506 = vmatpush.msra.mxu0 %v2691_v6  ;;  %2026 = vmatpush.msra.mxu3 %v2691_v6  ;;  %v795_v32 = vld [vmem:[%s2653_s29 + $0x28] sm:$0xff]  ;;  %v798_v38 = vld [vmem:[%s2653_s29 + $0x70] sm:$0xff]  ;;  %v2869_v39 = vld [vmem:[%s2653_s29 + $0x80] sm:$0xff] }
  0x5c   : > { %2027 = vmatpush.msra.mxu1 %v2697_v7  ;;  %2028 = vmatpush.msra.mxu2 %v2697_v7  ;;  %v2864_v37 = vld [vmem:[%s2653_s29 + $0x68] sm:$0xff]  ;;  %v2874_v41 = vld [vmem:[%s2653_s29 + $0x98] sm:$0xff]  ;;  %v800_v42 = vld [vmem:[%s2653_s29 + $0xa0] sm:$0xff] }
  0x5d   : > { %507 = vmatpush.msra.mxu0 %v2697_v7  ;;  %2029 = vmatpush.msra.mxu3 %v2697_v7  ;;  %v799_v40 = vld [vmem:[%s2653_s29 + $0x88] sm:$0xff]  ;;  %v2879_v43 = vld [vmem:[%s2653_s29 + $0xb0] sm:$0xff]  ;;  %v801_v44 = vld [vmem:[%s2653_s29 + $0xb8] sm:$0xff] }
  0x5e   : > { %2030 = vmatpush.msra.mxu1 %v2703_v8  ;;  %2031 = vmatpush.msra.mxu2 %v2703_v8  ;;  %v2884_v45 = vld [vmem:[%s2653_s29 + $0xc8] sm:$0xff]  ;;  %v802_v46 = vld [vmem:[%s2653_s29 + $0xd0] sm:$0xff]  ;;  %v2888_v47 = vld [vmem:[%s2653_s29 + $0x120] sm:$0xff] }
  0x5f   : > { %508 = vmatpush.msra.mxu0 %v2703_v8  ;;  %2032 = vmatpush.msra.mxu3 %v2703_v8  ;;  %v2893_v48 = vld [vmem:[%s2653_s29 + $0xe0] sm:$0xff]  ;;  %v803_v49 = vld [vmem:[%s2653_s29 + $0xe8] sm:$0xff]  ;;  %v2897_v50 = vld [vmem:[%s2653_s29 + $0x138] sm:$0xff] }
  0x60   : > { %2033 = vmatpush.msra.mxu1 %v2709_v9  ;;  %2034 = vmatpush.msra.mxu2 %v2709_v9  ;;  %v2902_v51 = vld [vmem:[%s2653_s29 + $0xf8] sm:$0xff]  ;;  %v804_v52 = vld [vmem:[%s2653_s29 + $0x100] sm:$0xff]  ;;  %v2906_v53 = vld [vmem:[%s2653_s29 + $0x150] sm:$0xff] }
  0x61   : > { %509 = vmatpush.msra.mxu0 %v2709_v9  ;;  %2035 = vmatpush.msra.mxu3 %v2709_v9  ;;  %v2911_v54 = vld [vmem:[%s2653_s29 + $0x110] sm:$0xff]  ;;  %v805_v55 = vld [vmem:[%s2653_s29 + $0x118] sm:$0xff]  ;;  %v2915_v56 = vld [vmem:[%s2653_s29 + $0x168] sm:$0xff] }
  0x62   : > { %2036 = vmatpush.msra.mxu1 %v2715_v10  ;;  %2037 = vmatpush.msra.mxu2 %v2715_v10  ;;  %v806_v58 = vld [vmem:[%s2653_s29 + $0x130] sm:$0xff]  ;;  %v2923_v59 = vld [vmem:[%s2653_s29 + $0x128] sm:$0xff]  ;;  %v1178_v60 = vld [vmem:[#allocation10 + $0x78] sm:$0xff] }
  0x63   : > { %510 = vmatpush.msra.mxu0 %v2715_v10  ;;  %2038 = vmatpush.msra.mxu3 %v2715_v10  ;;  %v1177_v61 = vld [vmem:[#allocation10 + $0x70] sm:$0xff]  ;;  %v1176_v62 = vld [vmem:[#allocation10 + $0x68] sm:$0xff]  ;;  %v1175_v0 = vld [vmem:[#allocation10 + $0x60] sm:$0xff] }
  0x64   : > { %2039 = vmatpush.msra.mxu1 %v2721_v11  ;;  %2040 = vmatpush.msra.mxu2 %v2721_v11 }
  0x65   : > { %511 = vmatpush.msra.mxu0 %v2721_v11  ;;  %2041 = vmatpush.msra.mxu3 %v2721_v11 }
  0x66   : > { %2042 = vmatpush.msra.mxu1 %v2727_v12  ;;  %2043 = vmatpush.msra.mxu2 %v2727_v12 }
  0x67   : > { %512 = vmatpush.msra.mxu0 %v2727_v12  ;;  %2044 = vmatpush.msra.mxu3 %v2727_v12 }
  0x68   : > { %2045 = vmatpush.msra.mxu1 %v2733_v13  ;;  %2046 = vmatpush.msra.mxu2 %v2733_v13 }
  0x69   : > { %513 = vmatpush.msra.mxu0 %v2733_v13  ;;  %2047 = vmatpush.msra.mxu3 %v2733_v13 }
  0x6a   : > { %2048 = vmatpush.msra.mxu1 %v2739_v14  ;;  %2049 = vmatpush.msra.mxu2 %v2739_v14 }
  0x6b   : > { %514 = vmatpush.msra.mxu0 %v2739_v14  ;;  %2050 = vmatpush.msra.mxu3 %v2739_v14 }
  0x6c   : > { %2051 = vmatpush.msra.mxu1 %v2745_v15  ;;  %2052 = vmatpush.msra.mxu2 %v2745_v15 }
  0x6d   : > { %515 = vmatpush.msra.mxu0 %v2745_v15  ;;  %2053 = vmatpush.msra.mxu3 %v2745_v15 }
  0x6e   : > { %2054 = vmatpush.msra.mxu1 %v2751_v16  ;;  %2055 = vmatpush.msra.mxu2 %v2751_v16 }
  0x6f   : > { %529 = vmatmul.f32.vlgmr.msra.gmra.mxu1 %v2758_v17  ;;  %541 = vmatmul.f32.vlgmr.msra.gmra.mxu2 %v2761_v18 }
  0x70   : > { %810 = vmatpush.msrb.mxu2 %v2667_v1  ;;  %649 = vmatpush.msrb.mxu1 %v2667_v1  ;;  %v1162_v1 = vld [vmem:[#allocation8 + $0x78] sm:$0xff] }
  0x71   : > { %516 = vmatpush.msra.mxu0 %v2751_v16  ;;  %2056 = vmatpush.msra.mxu3 %v2751_v16 }
  0x72   : > { %811 = vmatpush.msrb.mxu2 %v2669_v2  ;;  %650 = vmatpush.msrb.mxu1 %v2669_v2  ;;  %v807_v2 = vld [vmem:[%s2653_s29 + $0x148] sm:$0xff] }
  0x73   : > { %517 = vmatmul.f32.vlgmr.msra.gmra.mxu0 %v2772_v19  ;;  %553 = vmatmul.f32.vlgmr.msra.gmra.mxu3 %v2888_v47 }
  0x74   : > { %812 = vmatpush.msrb.mxu2 %v2673_v3  ;;  %651 = vmatpush.msrb.mxu1 %v2673_v3 }
  0x75   : > { %1179 = vmatpush.msrb.mxu3 %v1178_v60  ;;  %1244 = vmatpush.msrb.mxu0 %v1162_v1  ;;  %v1166_v60 = vld [vmem:[#allocation10 + $0x18] sm:$0xff]  ;;  %v1164_v1 = vld [vmem:[#allocation10 + $0x8] sm:$0xff] }
  0x76   : > { %813 = vmatpush.msrb.mxu2 %v2679_v4  ;;  %652 = vmatpush.msrb.mxu1 %v2679_v4  ;;  %v2932_v4 = vld [vmem:[%s2653_s29 + $0x140] sm:$0xff] }
  0x77   : > { %532 = vmatmul.f32.gmra.mxu1 %v2782_v20  ;;  %544 = vmatmul.f32.gmra.mxu2 %v2785_v21 }
  0x78   : > { %814 = vmatpush.msrb.mxu2 %v2685_v5  ;;  %653 = vmatpush.msrb.mxu1 %v2685_v5  ;;  %v1174_v5 = vld [vmem:[#allocation10 + $0x58] sm:$0xff] }
  0x79   : > { %1180 = vmatpush.msrb.mxu3 %v1177_v61  ;;  %v1153_v61 = vld [vmem:[#allocation8 + $0x30] sm:$0xff] }
  0x7a   : > { %815 = vmatpush.msrb.mxu2 %v2691_v6  ;;  %654 = vmatpush.msrb.mxu1 %v2691_v6  ;;  %v1161_v6 = vld [vmem:[#allocation8 + $0x70] sm:$0xff] }
  0x7b   : > { %520 = vmatmul.f32.gmra.mxu0 %v2794_v22  ;;  %556 = vmatmul.f32.gmra.mxu3 %v2897_v50 }
  0x7c   : > { %816 = vmatpush.msrb.mxu2 %v2697_v7  ;;  %655 = vmatpush.msrb.mxu1 %v2697_v7  ;;  %v1173_v7 = vld [vmem:[#allocation10 + $0x50] sm:$0xff] }
  0x7d   : > { %1181 = vmatpush.msrb.mxu3 %v1176_v62  ;;  %1245 = vmatpush.msrb.mxu0 %v1161_v6  ;;  %v1165_v62 = vld [vmem:[#allocation10 + $0x10] sm:$0xff]  ;;  %v1163_v6 = vld [vmem:[#allocation10] sm:$0xff] }
  0x7e   : > { %817 = vmatpush.msrb.mxu2 %v2703_v8  ;;  %656 = vmatpush.msrb.mxu1 %v2703_v8  ;;  %v1160_v8 = vld [vmem:[#allocation8 + $0x68] sm:$0xff] }
  0x7f   : > { %535 = vmatmul.f32.gmra.mxu1 %v2802_v23  ;;  %547 = vmatmul.f32.gmra.mxu2 %v2805_v24 }
  0x80   : > { %818 = vmatpush.msrb.mxu2 %v2709_v9  ;;  %657 = vmatpush.msrb.mxu1 %v2709_v9  ;;  %v1172_v9 = vld [vmem:[#allocation10 + $0x48] sm:$0xff] }
  0x81   : > { %1182 = vmatpush.msrb.mxu3 %v1175_v0  ;;  %1246 = vmatpush.msrb.mxu0 %v1160_v8  ;;  %v1152_v0 = vld [vmem:[#allocation8 + $0x28] sm:$0xff] }
  0x82   : > { %819 = vmatpush.msrb.mxu2 %v2715_v10  ;;  %658 = vmatpush.msrb.mxu1 %v2715_v10  ;;  %v1159_v10 = vld [vmem:[#allocation8 + $0x60] sm:$0xff] }
  0x83   : > { %523 = vmatmul.f32.gmra.mxu0 %v2814_v25  ;;  %559 = vmatmul.f32.gmra.mxu3 %v2906_v53 }
  0x84   : > { %820 = vmatpush.msrb.mxu2 %v2721_v11  ;;  %659 = vmatpush.msrb.mxu1 %v2721_v11 }
  0x85   : > { %1183 = vmatpush.msrb.mxu3 %v1174_v5  ;;  %1247 = vmatpush.msrb.mxu0 %v1159_v10 }
  0x86   : > { %821 = vmatpush.msrb.mxu2 %v2727_v12  ;;  %660 = vmatpush.msrb.mxu1 %v2727_v12  ;;  %v1171_v12 = vld [vmem:[#allocation10 + $0x40] sm:$0xff] }
  0x87   : > { %538 = vmatmul.f32.gmra.mxu1 %v2822_v26  ;;  %550 = vmatmul.f32.gmra.mxu2 %v2825_v27 }
  0x88   : > { %822 = vmatpush.msrb.mxu2 %v2733_v13  ;;  %661 = vmatpush.msrb.mxu1 %v2733_v13  ;;  %v1158_v13 = vld [vmem:[#allocation8 + $0x58] sm:$0xff] }
  0x89   : > { %1184 = vmatpush.msrb.mxu3 %v1173_v7  ;;  %1248 = vmatpush.msrb.mxu0 %v1158_v13  ;;  %v1150_v7 = vld [vmem:[#allocation8 + $0x18] sm:$0xff] }
  0x8a   : > { %823 = vmatpush.msrb.mxu2 %v2739_v14  ;;  %662 = vmatpush.msrb.mxu1 %v2739_v14  ;;  %v808_v14 = vld [vmem:[%s2653_s29 + $0x160] sm:$0xff] }
  0x8b   : > { %526 = vmatmul.f32.gmra.mxu0 %v2834_v28  ;;  %562 = vmatmul.f32.gmra.mxu3 %v2915_v56 }
  0x8c   : > { %824 = vmatpush.msrb.mxu2 %v2745_v15  ;;  %663 = vmatpush.msrb.mxu1 %v2745_v15 }
  0x8d   : > { %1185 = vmatpush.msrb.mxu3 %v1172_v9 }
  0x8e   : > { %825 = vmatpush.msrb.mxu2 %v2751_v16  ;;  %664 = vmatpush.msrb.mxu1 %v2751_v16  ;;  %v2941_v16 = vld [vmem:[%s2653_s29 + $0x158] sm:$0xff] }
  0x8f   : > { %665 = vmatmul.f32.vlgmr.msrb.gmra.mxu1 %v2842_v29  ;;  %826 = vmatmul.f32.vlgmr.msrb.gmra.mxu2 %v794_v30  ;;  %v1170_v30 = vld [vmem:[#allocation10 + $0x38] sm:$0xff] }
  0x90   : > { %1186 = vmatpush.msrb.mxu3 %v1171_v12  ;;  %v1149_v12 = vld [vmem:[#allocation8 + $0x10] sm:$0xff] }
  0x92   : > { %1187 = vmatpush.msrb.mxu3 %v1170_v30  ;;  %v1147_v30 = vld [vmem:[#allocation8] sm:$0xff] }
  0x97   : > { %668 = vmatmul.f32.gmra.mxu1 %v2849_v31  ;;  %829 = vmatmul.f32.gmra.mxu2 %v795_v32  ;;  %v1157_v32 = vld [vmem:[#allocation8 + $0x50] sm:$0xff] }
  0x98   : > { %1249 = vmatpush.msrb.mxu0 %v1157_v32 }
  0x9f   : > { %671 = vmatmul.f32.gmra.mxu1 %v2854_v33  ;;  %832 = vmatmul.f32.gmra.mxu2 %v796_v34  ;;  %v1169_v34 = vld [vmem:[#allocation10 + $0x30] sm:$0xff] }
  0xa0   : > { %1188 = vmatpush.msrb.mxu3 %v1169_v34 }
  0xa7   : > { %674 = vmatmul.f32.gmra.mxu1 %v2859_v35  ;;  %835 = vmatmul.f32.gmra.mxu2 %v797_v36  ;;  %v1156_v36 = vld [vmem:[#allocation8 + $0x48] sm:$0xff] }
  0xa8   : > { %1250 = vmatpush.msrb.mxu0 %v1156_v36  ;;  %v452_v36 = vld [vmem:[%s2646_s10] sm:$0xff] }
  0xaf   : > { %677 = vmatmul.f32.gmra.mxu1 %v2864_v37  ;;  %838 = vmatmul.f32.gmra.mxu2 %v798_v38  ;;  %v1168_v38 = vld [vmem:[#allocation10 + $0x28] sm:$0xff] }
  0xb0   : > { %1189 = vmatpush.msrb.mxu3 %v1168_v38 }
  0xb7   : > { %680 = vmatmul.f32.gmra.mxu1 %v2869_v39  ;;  %841 = vmatmul.f32.gmra.mxu2 %v799_v40  ;;  %v1155_v40 = vld [vmem:[#allocation8 + $0x40] sm:$0xff] }
  0xb8   : > { %1251 = vmatpush.msrb.mxu0 %v1155_v40 }
  0xbf   : > { %683 = vmatmul.f32.gmra.mxu1 %v2874_v41  ;;  %844 = vmatmul.f32.gmra.mxu2 %v800_v42 }
  0xc7   : > { %686 = vmatmul.f32.gmra.mxu1 %v2879_v43  ;;  %847 = vmatmul.f32.gmra.mxu2 %v801_v44  ;;  %v1167_v44 = vld [vmem:[#allocation10 + $0x20] sm:$0xff] }
  0xc8   : > { %1190 = vmatpush.msrb.mxu3 %v1167_v44 }
  0xca   : > { %1191 = vmatpush.msrb.mxu3 %v1166_v60 }
  0xcc   : > { %1192 = vmatpush.msrb.mxu3 %v1165_v62 }
  0xce   : > { %1193 = vmatpush.msrb.mxu3 %v1164_v1 }
  0xcf   : > { %689 = vmatmul.f32.gmra.mxu1 %v2884_v45  ;;  %850 = vmatmul.f32.gmra.mxu2 %v802_v46  ;;  %v1154_v46 = vld [vmem:[#allocation8 + $0x38] sm:$0xff] }
  0xd0   : > { %1252 = vmatpush.msrb.mxu0 %v1154_v46  ;;  %1194 = vmatpush.msrb.mxu3 %v1163_v6 }
  0xd2   : > { %1253 = vmatpush.msrb.mxu0 %v1153_v61 }
  0xd4   : > { %1254 = vmatpush.msrb.mxu0 %v1152_v0  ;;  %v453_v0 = vld [vmem:[%s2646_s10 + $0x8] sm:$0xff] }
  0xd7   : > { %692 = vmatmul.f32.gmra.mxu1 %v2893_v48  ;;  %853 = vmatmul.f32.gmra.mxu2 %v803_v49  ;;  %v2947_v49 = vld [vmem:[%s2653_s29 + $0x178] sm:$0xff] }
  0xdf   : > { %695 = vmatmul.f32.gmra.mxu1 %v2902_v51  ;;  %856 = vmatmul.f32.gmra.mxu2 %v804_v52 }
  0xe7   : > { %698 = vmatmul.f32.gmra.mxu1 %v2911_v54  ;;  %859 = vmatmul.f32.gmra.mxu2 %v805_v55  ;;  %v2952_v55 = vld [vmem:[%s2653_s29 + $0x170] sm:$0xff] }
  0xec   : > { %v2919_v57 = vpop.f32.mrf.mxu1 }
  0xef   : > { %862 = vmatmul.f32.gmra.mxu2 %v806_v58  ;;  %701 = vmatmul.f32.gmra.mxu1 %v2923_v59 }
  0xf0   : > { %v518_v58 = vpop.f32.mrf.mxu0 }
  0xf1   : > { %v566_v10 = vmul.f32 %v518_v58, %v518_v58 }
  0xf2   : > { %v2926_v63 = vpop.f32.mrf.mxu2 }
  0xf4   : > { %v2929_v3 = vpop.f32.mrf.mxu1 }
  0xf7   : > { %865 = vmatmul.f32.gmra.mxu2 %v807_v2  ;;  %704 = vmatmul.f32.gmra.mxu1 %v2932_v4  ;;  %v1151_v2 = vld [vmem:[#allocation8 + $0x20] sm:$0xff] }
  0xf8   : > { %1255 = vmatpush.msrb.mxu0 %v1151_v2  ;;  %v521_v13 = vpop.f32.mrf.mxu0 }
  0xf9   : > { %v567_v60 = vmul.f32 %v521_v13, %v521_v13 }
  0xfa   : > { %v2935_v11 = vpop.f32.mrf.mxu2  ;;  %1256 = vmatpush.msrb.mxu0 %v1150_v7 }
  0xfc   : > { %v2938_v15 = vpop.f32.mrf.mxu1  ;;  %1257 = vmatpush.msrb.mxu0 %v1149_v12 }
  0xff   : > { %868 = vmatmul.f32.gmra.mxu2 %v808_v14  ;;  %707 = vmatmul.f32.gmra.mxu1 %v2941_v16  ;;  %v1148_v14 = vld [vmem:[#allocation8 + $0x8] sm:$0xff] }
 0x100   : > { %1258 = vmatpush.msrb.mxu0 %v1148_v14  ;;  %v524_v61 = vpop.f32.mrf.mxu0 }
 0x102   : > { %v2944_v42 = vpop.f32.mrf.mxu2  ;;  %1259 = vmatpush.msrb.mxu0 %v1147_v30 }
 0x103   : > { %1260 = vmatmul.f32.vlgmr.msrb.gmra.mxu0 %v452_v36 }
 0x104   : > { %v2949_v52 = vpop.f32.mrf.mxu1 }
 0x107   : > { %871 = vmatmul.f32.gmra.mxu2 %v2947_v49  ;;  %710 = vmatmul.f32.gmra.mxu1 %v2952_v55 }
 0x108   : > { %v527_v30 = vpop.f32.mrf.mxu0 }
 0x10a   : > { %v2956_v5 = vpop.f32.mrf.mxu2 }
 0x10b   : > { %1263 = vmatmul.f32.gmra.mxu0 %v453_v0 }
 0x10c   : > { %v666_v8 = vpop.f32.mrf.mxu1 }
 0x10d   : > { %v714_v9 = vmul.f32 %v666_v8, %v666_v8 }
 0x10f   : > { %v730_v32 = vadd.f32 %v714_v9, %v566_v10  ;;  %v568_v9 = vmul.f32 %v524_v61, %v524_v61 }
 0x112   : > { %v827_v34 = vpop.f32.mrf.mxu2 }
 0x113   : > { %v875_v38 = vmul.f32 %v827_v34, %v827_v34  ;;  %v454_v34 = vld [vmem:[%s2646_s10 + $0x10] sm:$0xff] }
 0x114   : > { %v669_v40 = vpop.f32.mrf.mxu1  ;;  %1266 = vmatmul.f32.gmra.mxu0 %v454_v34 }
 0x115   : > { %v891_v44 = vadd.f32 %v875_v38, %v730_v32  ;;  %v715_v46 = vmul.f32 %v669_v40, %v669_v40 }
 0x117   : > { %2147 = vrsqrt.f32 %v891_v44  ;;  %v731_v58 = vadd.f32 %v715_v46, %v567_v60  ;;  %vm962_vm0 = vcmp.eq.f32.partialorder %v891_v44, inf  ;;  %vm964_vm1 = vcmp.eq.f32.partialorder %v891_v44, 0.0 }
 0x11a   : > { %v830_v62 = vpop.f32.mrf.mxu2 }
 0x11b   : > { %v876_v1 = vmul.f32 %v830_v62, %v830_v62  ;;  %v569_v62 = vmul.f32 %v527_v30, %v527_v30  ;;  %v2972_v30 = vld [vmem:[%s3649_s3] ss:$0 sm:$0xff] }
 0x11c   : > { %v672_v2 = vpop.f32.mrf.mxu1 }
 0x11d   : > { %v2148_v6 = vpop.eup %2147  ;;  %v2960_v7 = vadd.f32 %v876_v1, %v731_v58  ;;  %v716_v8 = vmul.f32 %v672_v2, %v672_v2 }
 0x11e   : > { %v956_v10 = vmul.f32 %v2148_v6, %v891_v44 }
 0x11f   : > { %2149 = vrsqrt.f32 %v2960_v7  ;;  %v732_v14 = vadd.f32 %v716_v8, %v568_v9  ;;  %v965_v9 = vand.u32 2147483648, %v891_v44  ;;  %vm974_vm2 = vcmp.eq.f32.partialorder %v2960_v7, inf }
 0x120   : > { %v957_v12 = vmul.f32 %v2148_v6, %v956_v10  ;;  %vm976_vm3 = vcmp.eq.f32.partialorder %v2960_v7, 0.0 }
 0x122   : > { %v833_v13 = vpop.f32.mrf.mxu2  ;;  %v958_v32 = vmul.f32 0.5, %v957_v12 }
 0x123   : > { %v877_v36 = vmul.f32 %v833_v13, %v833_v13 }
 0x124   : > { %v675_v38 = vpop.f32.mrf.mxu1  ;;  %v959_v40 = vsub.f32 1.5, %v958_v32  ;;  %v455_v32 = vld [vmem:[%s2646_s10 + $0x18] sm:$0xff] }
 0x125   : > { %v2150_v46 = vpop.eup %2149  ;;  %v2964_v60 = vadd.f32 %v877_v36, %v732_v14  ;;  %v717_v58 = vmul.f32 %v675_v38, %v675_v38  ;;  %1269 = vmatmul.f32.gmra.mxu0 %v455_v32 }
 0x126   : > { %v960_v61 = vmul.f32 %v2148_v6, %v959_v40  ;;  %v968_v0 = vmul.f32 %v2150_v46, %v2960_v7 }
 0x127   : > { %2151 = vrsqrt.f32 %v2964_v60  ;;  %v733_v8 = vadd.f32 %v717_v58, %v569_v62  ;;  %vm986_vm4 = vcmp.eq.f32.partialorder %v2964_v60, inf  ;;  %vm988_vm5 = vcmp.eq.f32.partialorder %v2964_v60, 0.0 }
 0x128   : > { %v961_v1 = vmul.f32 %v960_v61, %v891_v44  ;;  %v969_v2 = vmul.f32 %v2150_v46, %v968_v0  ;;  %v585_v61 = vmul.f32 %v2972_v30, %v2772_v19 }
 0x12a   : > { %v836_v10 = vpop.f32.mrf.mxu2  ;;  %v963_v12 = vsel %vm962_vm0, %v891_v44, %v961_v1  ;;  %v970_v13 = vmul.f32 0.5, %v969_v2  ;;  %v587_v44 = vmul.f32 %v2972_v30, %v2814_v25  ;;  %601 = vadd.xlane.f32.xlu0 %v585_v61 }
 0x12b   : > { %v878_v34 = vmul.f32 %v836_v10, %v836_v10  ;;  %v966_v14 = vsel %vm964_vm1, %v965_v9, %v963_v12  ;;  %v456_v10 = vld [vmem:[%s2646_s10 + $0x20] sm:$0xff] }
 0x12c   : > { %v678_v36 = vpop.f32.mrf.mxu1  ;;  %1195 = vmatmul.f32.vlgmr.msrb.gmra.mxu3 %v966_v14  ;;  %v971_v6 = vsub.f32 1.5, %v970_v13  ;;  %605 = vadd.xlane.f32.xlu1 %v587_v44 }
 0x12d   : > { %v2152_v38 = vpop.eup %2151  ;;  %v2974_v40 = vadd.f32 %v878_v34, %v733_v8  ;;  %v718_v0 = vmul.f32 %v678_v36, %v678_v36  ;;  %v977_v8 = vand.u32 2147483648, %v2960_v7  ;;  %1272 = vmatmul.f32.gmra.mxu0 %v456_v10 }
 0x12e   : > { %v972_v58 = vmul.f32 %v2150_v46, %v971_v6  ;;  %v980_v62 = vmul.f32 %v2152_v38, %v2964_v60  ;;  %v570_v46 = vmul.f32 %v2919_v57, %v2919_v57 }
 0x12f   : > { %2153 = vrsqrt.f32 %v2974_v40  ;;  %vm998_vm6 = vcmp.eq.f32.partialorder %v2974_v40, inf  ;;  %vm1000_vm7 = vcmp.eq.f32.partialorder %v2974_v40, 0.0 }
 0x130   : > { %v973_v1 = vmul.f32 %v972_v58, %v2960_v7  ;;  %v981_v2 = vmul.f32 %v2152_v38, %v980_v62  ;;  %v734_v12 = vadd.f32 %v718_v0, %v570_v46  ;;  %v589_v62 = vmul.f32 %v2972_v30, %v2758_v17 }
 0x131   : > { %v989_v17 = vand.u32 2147483648, %v2964_v60 }
 0x132   : > { %v839_v9 = vpop.f32.mrf.mxu2  ;;  %v975_v25 = vsel %vm974_vm2, %v2960_v7, %v973_v1  ;;  %v982_v19 = vmul.f32 0.5, %v981_v2  ;;  %v588_v7 = vmul.f32 %v2972_v30, %v2834_v28  ;;  %609 = vadd.xlane.f32.xlu2 %v589_v62  ;;  %v571_v1 = vmul.f32 %v2929_v3, %v2929_v3 }
 0x133   : > { %v879_v13 = vmul.f32 %v839_v9, %v839_v9  ;;  %v978_v32 = vsel %vm976_vm3, %v977_v8, %v975_v25  ;;  %v457_v8 = vld [vmem:[%s2646_s10 + $0x28] sm:$0xff]  ;;  %v572_v62 = vmul.f32 %v2938_v15, %v2938_v15 }
 0x134   : > { %v681_v34 = vpop.f32.mrf.mxu1  ;;  %1198 = vmatmul.f32.gmra.mxu3 %v978_v32  ;;  %v983_v14 = vsub.f32 1.5, %v982_v19  ;;  %607 = vadd.xlane.f32.xlu1 %v588_v7 }
 0x135   : > { %v2154_v36 = vpop.eup %2153  ;;  %v2990_v57 = vadd.f32 %v879_v13, %v734_v12  ;;  %v719_v44 = vmul.f32 %v681_v34, %v681_v34  ;;  %1275 = vmatmul.f32.gmra.mxu0 %v457_v8  ;;  %v590_v34 = vmul.f32 %v2972_v30, %v2782_v20  ;;  %v1001_v20 = vand.u32 2147483648, %v2974_v40 }
 0x136   : > { %v984_v6 = vmul.f32 %v2152_v38, %v983_v14  ;;  %v992_v58 = vmul.f32 %v2154_v36, %v2974_v40  ;;  %v586_v38 = vmul.f32 %v2972_v30, %v2794_v22  ;;  %v593_v8 = vmul.f32 %v2972_v30, %v2761_v18 }
 0x137   : > { %2155 = vrsqrt.f32 %v2990_v57  ;;  %v735_v9 = vadd.f32 %v719_v44, %v571_v1  ;;  %vm1010_vm8 = vcmp.eq.f32.partialorder %v2990_v57, inf  ;;  %v1013_v18 = vand.u32 2147483648, %v2990_v57 }
 0x138   : > { %v985_v61 = vmul.f32 %v984_v6, %v2964_v60  ;;  %v993_v0 = vmul.f32 %v2154_v36, %v992_v58  ;;  %603 = vadd.xlane.f32.xlu0 %v586_v38  ;;  %vm1012_vm9 = vcmp.eq.f32.partialorder %v2990_v57, 0.0 }
 0x13a   : > { %v842_v28 = vpop.f32.mrf.mxu2  ;;  %v987_v2 = vsel %vm986_vm4, %v2964_v60, %v985_v61  ;;  %v994_v46 = vmul.f32 0.5, %v993_v0  ;;  %v592_v60 = vmul.f32 %v2972_v30, %v2822_v26  ;;  %611 = vadd.xlane.f32.xlu2 %v590_v34  ;;  %v458_v61 = vld [vmem:[%s2646_s10 + $0x30] sm:$0xff] }
 0x13b   : > { %v880_v25 = vmul.f32 %v842_v28, %v842_v28  ;;  %v990_v19 = vsel %vm988_vm5, %v989_v17, %v987_v2 }
 0x13c   : > { %v684_v22 = vpop.f32.mrf.mxu1  ;;  %1201 = vmatmul.f32.gmra.mxu3 %v990_v19  ;;  %v995_v10 = vsub.f32 1.5, %v994_v46  ;;  %615 = vadd.xlane.f32.xlu1 %v592_v60 }
 0x13d   : > { %v2156_v3 = vpop.eup %2155  ;;  %v3008_v12 = vadd.f32 %v880_v25, %v735_v9  ;;  %v720_v14 = vmul.f32 %v684_v22, %v684_v22  ;;  %1278 = vmatmul.f32.gmra.mxu0 %v458_v61  ;;  %v594_v22 = vmul.f32 %v2972_v30, %v2785_v21 }
 0x13e   : > { %v996_v13 = vmul.f32 %v2154_v36, %v995_v10  ;;  %v1004_v32 = vmul.f32 %v2156_v3, %v2990_v57  ;;  %v591_v36 = vmul.f32 %v2972_v30, %v2802_v23  ;;  %v573_v10 = vmul.f32 %v2949_v52, %v2949_v52 }
 0x13f   : > { %2157 = vrsqrt.f32 %v3008_v12  ;;  %v736_v0 = vadd.f32 %v720_v14, %v572_v62  ;;  %v598_v62 = vmul.f32 %v2972_v30, %v2897_v50  ;;  %vm1022_vm10 = vcmp.eq.f32.partialorder %v3008_v12, inf }
 0x140   : > { %v997_v6 = vmul.f32 %v996_v13, %v2974_v40  ;;  %v1005_v58 = vmul.f32 %v2156_v3, %v1004_v32  ;;  %613 = vadd.xlane.f32.xlu0 %v591_v36  ;;  %v459_v32 = vld [vmem:[%s2646_s10 + $0x38] sm:$0xff]  ;;  %v596_v36 = vmul.f32 %v2972_v30, %v2825_v27  ;;  %v574_v27 = vmul.f32 %v2926_v63, %v2926_v63 }
 0x141   : > { %v1025_v50 = vand.u32 2147483648, %v3008_v12  ;;  %vm1024_vm11 = vcmp.eq.f32.partialorder %v3008_v12, 0.0 }
 0x142   : > { %v845_v26 = vpop.f32.mrf.mxu2  ;;  %v999_v7 = vsel %vm998_vm6, %v2974_v40, %v997_v6  ;;  %v1006_v44 = vmul.f32 0.5, %v1005_v58  ;;  %v595_v40 = vmul.f32 %v2972_v30, %v2805_v24  ;;  %617 = vadd.xlane.f32.xlu2 %v593_v8 }
 0x143   : > { %v881_v38 = vmul.f32 %v845_v26, %v845_v26  ;;  %v1002_v1 = vsel %vm1000_vm7, %v1001_v20, %v999_v7  ;;  %v597_v26 = vmul.f32 %v2972_v30, %v2888_v47 }
 0x144   : > { %v687_v23 = vpop.f32.mrf.mxu1  ;;  %1204 = vmatmul.f32.gmra.mxu3 %v1002_v1  ;;  %v1007_v17 = vsub.f32 1.5, %v1006_v44  ;;  %621 = vadd.xlane.f32.xlu1 %v595_v40  ;;  %v460_v1 = vld [vmem:[%s2646_s10 + $0x40] sm:$0xff]  ;;  %v599_v40 = vmul.f32 %v2972_v30, %v2906_v53  ;;  %v575_v53 = vmul.f32 %v2935_v11, %v2935_v11 }
 0x145   : > { %v2158_v15 = vpop.eup %2157  ;;  %v3026_v28 = vadd.f32 %v881_v38, %v736_v0  ;;  %v721_v9 = vmul.f32 %v687_v23, %v687_v23  ;;  %1281 = vmatmul.f32.gmra.mxu0 %v459_v32 }
 0x146   : > { %v1008_v2 = vmul.f32 %v2156_v3, %v1007_v17  ;;  %v1016_v46 = vmul.f32 %v2158_v15, %v3008_v12 }
 0x147   : > { %2159 = vrsqrt.f32 %v3026_v28  ;;  %v737_v34 = vadd.f32 %v721_v9, %v573_v10  ;;  %v746_v9 = vmul.f32 %v2972_v30, %v2842_v29  ;;  %vm1034_vm12 = vcmp.eq.f32.partialorder %v3026_v28, inf }
 0x148   : > { %v1009_v25 = vmul.f32 %v1008_v2, %v2990_v57  ;;  %v1017_v19 = vmul.f32 %v2158_v15, %v1016_v46  ;;  %619 = vadd.xlane.f32.xlu0 %v594_v22  ;;  %v1037_v29 = vand.u32 2147483648, %v3026_v28  ;;  %vm1036_vm13 = vcmp.eq.f32.partialorder %v3026_v28, 0.0 }
 0x14a   : > { %v848_v24 = vpop.f32.mrf.mxu2  ;;  %v1011_v3 = vsel %vm1010_vm8, %v2990_v57, %v1009_v25  ;;  %v1018_v13 = vmul.f32 0.5, %v1017_v19  ;;  %623 = vadd.xlane.f32.xlu2 %v596_v36  ;;  %v600_v19 = vmul.f32 %v2972_v30, %v2915_v56  ;;  %v749_v36 = vmul.f32 %v2972_v30, %v2859_v35 }
 0x14b   : > { %v882_v60 = vmul.f32 %v848_v24, %v848_v24  ;;  %v1014_v14 = vsel %vm1012_vm9, %v1013_v18, %v1011_v3 }
 0x14c   : > { %v690_v21 = vpop.f32.mrf.mxu1  ;;  %1207 = vmatmul.f32.gmra.mxu3 %v1014_v14  ;;  %v1019_v6 = vsub.f32 1.5, %v1018_v13  ;;  %627 = vadd.xlane.f32.xlu1 %v598_v62  ;;  %v461_v13 = vld [vmem:[%s2646_s10 + $0x48] sm:$0xff] }
 0x14d   : > { %v2160_v52 = vpop.eup %2159  ;;  %v3044_v58 = vadd.f32 %v882_v60, %v737_v34  ;;  %v722_v7 = vmul.f32 %v690_v21, %v690_v21  ;;  %1284 = vmatmul.f32.gmra.mxu0 %v460_v1 }
 0x14e   : > { %v1020_v57 = vmul.f32 %v2158_v15, %v1019_v6  ;;  %v1028_v20 = vmul.f32 %v2160_v52, %v3026_v28 }
 0x14f   : > { %2161 = vrsqrt.f32 %v3044_v58  ;;  %v738_v23 = vadd.f32 %v722_v7, %v574_v27  ;;  %vm1046_vm14 = vcmp.eq.f32.partialorder %v3044_v58, inf  ;;  %v1049_v35 = vand.u32 2147483648, %v3044_v58  ;;  %v462_v27 = vld [vmem:[%s2646_s10 + $0x50] sm:$0xff] }
 0x150   : > { %v1021_v44 = vmul.f32 %v1020_v57, %v3008_v12  ;;  %v1029_v61 = vmul.f32 %v2160_v52, %v1028_v20  ;;  %625 = vadd.xlane.f32.xlu0 %v597_v26  ;;  %v748_v57 = vmul.f32 %v2972_v30, %v2854_v33  ;;  %vm1048_vm15 = vcmp.eq.f32.partialorder %v3044_v58, 0.0 }
 0x152   : > { %v851_v0 = vpop.f32.mrf.mxu2  ;;  %v1023_v38 = vsel %vm1022_vm10, %v3008_v12, %v1021_v44  ;;  %v1030_v47 = vmul.f32 0.5, %v1029_v61  ;;  %629 = vadd.xlane.f32.xlu2 %v599_v40 }
 0x153   : > { %v883_v17 = vmul.f32 %v851_v0, %v851_v0  ;;  %v1026_v15 = vsel %vm1024_vm11, %v1025_v50, %v1023_v38 }
 0x154   : > { %v693_v2 = vpop.f32.mrf.mxu1  ;;  %1210 = vmatmul.f32.gmra.mxu3 %v1026_v15  ;;  %v1031_v46 = vsub.f32 1.5, %v1030_v47  ;;  %762 = vadd.xlane.f32.xlu1 %v746_v9  ;;  %v750_v15 = vmul.f32 %v2972_v30, %v2864_v37  ;;  %v577_v37 = vmul.f32 %v2956_v5, %v2956_v5 }
 0x155   : > { %v2162_v63 = vpop.eup %2161  ;;  %v3062_v8 = vadd.f32 %v883_v17, %v738_v23  ;;  %v723_v22 = vmul.f32 %v693_v2, %v693_v2  ;;  %1287 = vmatmul.f32.gmra.mxu0 %v461_v13 }
 0x156   : > { %v1032_v12 = vmul.f32 %v2160_v52, %v1031_v46  ;;  %v1040_v25 = vmul.f32 %v2162_v63, %v3044_v58  ;;  %v747_v52 = vmul.f32 %v2972_v30, %v2849_v31  ;;  %v576_v31 = vmul.f32 %v2944_v42, %v2944_v42  ;;  %v554_v42 = vpop.f32.mrf.mxu3 }
 0x157   : > { %2163 = vrsqrt.f32 %v3062_v8  ;;  %v739_v32 = vadd.f32 %v723_v22, %v575_v53  ;;  %vm1058_vm0 = vcmp.eq.f32.partialorder %v3062_v8, inf  ;;  %vm1060_vm1 = vcmp.eq.f32.partialorder %v3062_v8, 0.0  ;;  %v463_v22 = vld [vmem:[%s2646_s10 + $0x58] sm:$0xff] }
 0x158   : > { %v1033_v10 = vmul.f32 %v1032_v12, %v3026_v28  ;;  %v1041_v18 = vmul.f32 %v2162_v63, %v1040_v25  ;;  %631 = vadd.xlane.f32.xlu0 %v600_v19 }
 0x15a   : > { %v854_v24 = vpop.f32.mrf.mxu2  ;;  %v1035_v3 = vsel %vm1034_vm12, %v3026_v28, %v1033_v10  ;;  %v1042_v56 = vmul.f32 0.5, %v1041_v18  ;;  %764 = vadd.xlane.f32.xlu2 %v747_v52 }
 0x15b   : > { %v884_v34 = vmul.f32 %v854_v24, %v854_v24  ;;  %v1038_v60 = vsel %vm1036_vm13, %v1037_v29, %v1035_v3  ;;  %v578_v29 = vmul.f32 %v554_v42, %v554_v42 }
 0x15c   : > { %v696_v14 = vpop.f32.mrf.mxu1  ;;  %1213 = vmatmul.f32.gmra.mxu3 %v1038_v60  ;;  %v1043_v21 = vsub.f32 1.5, %v1042_v56  ;;  %768 = vadd.xlane.f32.xlu1 %v749_v36  ;;  %v464_v36 = vld [vmem:[%s2646_s10 + $0x60] sm:$0xff] }
 0x15d   : > { %v2164_v11 = vpop.eup %2163  ;;  %v3080_v6 = vadd.f32 %v884_v34, %v739_v32  ;;  %v724_v20 = vmul.f32 %v696_v14, %v696_v14  ;;  %1290 = vmatmul.f32.gmra.mxu0 %v462_v27  ;;  %v753_v32 = vmul.f32 %v2972_v30, %v2879_v43 }
 0x15e   : > { %v1044_v28 = vmul.f32 %v2162_v63, %v1043_v21  ;;  %v1052_v62 = vmul.f32 %v2164_v11, %v3062_v8  ;;  %v751_v63 = vmul.f32 %v2972_v30, %v2869_v39  ;;  %v557_v60 = vpop.f32.mrf.mxu3  ;;  %v754_v21 = vmul.f32 %v2972_v30, %v2884_v45 }
 0x15f   : > { %2165 = vrsqrt.f32 %v3080_v6  ;;  %v740_v50 = vadd.f32 %v724_v20, %v576_v31  ;;  %vm1070_vm2 = vcmp.eq.f32.partialorder %v3080_v6, inf  ;;  %v1073_v43 = vand.u32 2147483648, %v3080_v6 }
 0x160   : > { %v1045_v26 = vmul.f32 %v1044_v28, %v3044_v58  ;;  %v1053_v7 = vmul.f32 %v2164_v11, %v1052_v62  ;;  %766 = vadd.xlane.f32.xlu0 %v748_v57  ;;  %vm1072_vm3 = vcmp.eq.f32.partialorder %v3080_v6, 0.0  ;;  %v756_v31 = vmul.f32 %v2972_v30, %v2902_v51 }
 0x162   : > { %v857_v44 = vpop.f32.mrf.mxu2  ;;  %v1047_v61 = vsel %vm1046_vm14, %v3044_v58, %v1045_v26  ;;  %v1054_v33 = vmul.f32 0.5, %v1053_v7  ;;  %v752_v58 = vmul.f32 %v2972_v30, %v2874_v41  ;;  %770 = vadd.xlane.f32.xlu2 %v750_v15  ;;  %v1061_v41 = vand.u32 2147483648, %v3062_v8 }
 0x163   : > { %v885_v0 = vmul.f32 %v857_v44, %v857_v44  ;;  %v1050_v38 = vsel %vm1048_vm15, %v1049_v35, %v1047_v61  ;;  %v758_v35 = vmul.f32 %v2972_v30, %v2923_v59  ;;  %v465_v59 = vld [vmem:[%s2646_s10 + $0x68] sm:$0xff] }
 0x164   : > { %v699_v47 = vpop.f32.mrf.mxu1  ;;  %1216 = vmatmul.f32.gmra.mxu3 %v1050_v38  ;;  %v1055_v1 = vsub.f32 1.5, %v1054_v33  ;;  %774 = vadd.xlane.f32.xlu1 %v752_v58  ;;  %v579_v33 = vmul.f32 %v557_v60, %v557_v60  ;;  %v2244_v60 = vld [vmem:[%s2653_s29 + $0x40] sm:$0xff] }
 0x165   : > { %v2166_v23 = vpop.eup %2165  ;;  %v3098_v17 = vadd.f32 %v885_v0, %v740_v50  ;;  %v725_v40 = vmul.f32 %v699_v47, %v699_v47  ;;  %1293 = vmatmul.f32.gmra.mxu0 %v463_v22  ;;  %v757_v0 = vmul.f32 %v2972_v30, %v2911_v54 }
 0x166   : > { %v1056_v2 = vmul.f32 %v2164_v11, %v1055_v1  ;;  %v1064_v46 = vmul.f32 %v2166_v23, %v3080_v6  ;;  %v560_v47 = vpop.f32.mrf.mxu3 }
 0x167   : > { %2167 = vrsqrt.f32 %v3098_v17  ;;  %v741_v10 = vadd.f32 %v725_v40, %v577_v37  ;;  %vm1082_vm4 = vcmp.eq.f32.partialorder %v3098_v17, inf  ;;  %v1085_v42 = vand.u32 2147483648, %v3098_v17 }
 0x168   : > { %v1057_v9 = vmul.f32 %v1056_v2, %v3062_v8  ;;  %v1065_v12 = vmul.f32 %v2166_v23, %v1064_v46  ;;  %772 = vadd.xlane.f32.xlu0 %v751_v63  ;;  %vm1084_vm5 = vcmp.eq.f32.partialorder %v3098_v17, 0.0  ;;  %v759_v40 = vmul.f32 %v2972_v30, %v2932_v4  ;;  %v466_v4 = vld [vmem:[%s2646_s10 + $0x70] sm:$0xff] }
 0x16a   : > { %v860_v25 = vpop.f32.mrf.mxu2  ;;  %v1059_v19 = vsel %vm1058_vm0, %v3062_v8, %v1057_v9  ;;  %v1066_v39 = vmul.f32 0.5, %v1065_v12  ;;  %v755_v8 = vmul.f32 %v2972_v30, %v2893_v48  ;;  %776 = vadd.xlane.f32.xlu2 %v753_v32  ;;  %v761_v9 = vmul.f32 %v2972_v30, %v2952_v55 }
 0x16b   : > { %v886_v18 = vmul.f32 %v860_v25, %v860_v25  ;;  %v1062_v53 = vsel %vm1060_vm1, %v1061_v41, %v1059_v19  ;;  %v580_v41 = vmul.f32 %v560_v47, %v560_v47 }
 0x16c   : > { %1219 = vmatmul.f32.gmra.mxu3 %v1062_v53  ;;  %v702_v24 = vpop.f32.mrf.mxu1  ;;  %v1067_v5 = vsub.f32 1.5, %v1066_v39  ;;  %780 = vadd.xlane.f32.xlu1 %v755_v8  ;;  %v760_v39 = vmul.f32 %v2972_v30, %v2941_v16  ;;  %v2243_v8 = vld [vmem:[%s2653_s29 + $0x10] sm:$0xff] }
 0x16d   : > { %v2168_v3 = vpop.eup %2167  ;;  %v3116_v56 = vadd.f32 %v886_v18, %v741_v10  ;;  %v726_v13 = vmul.f32 %v702_v24, %v702_v24  ;;  %1296 = vmatmul.f32.gmra.mxu0 %v464_v36 }
 0x16e   : > { %v1068_v34 = vmul.f32 %v2166_v23, %v1067_v5  ;;  %v1076_v14 = vmul.f32 %v2168_v3, %v3098_v17  ;;  %v563_v16 = vpop.f32.mrf.mxu3 }
 0x16f   : > { %2169 = vrsqrt.f32 %v3116_v56  ;;  %v742_v28 = vadd.f32 %v726_v13, %v578_v29  ;;  %vm1094_vm6 = vcmp.eq.f32.partialorder %v3116_v56, inf  ;;  %v1097_v18 = vand.u32 2147483648, %v3116_v56 }
 0x170   : > { %v1069_v11 = vmul.f32 %v1068_v34, %v3080_v6  ;;  %v1077_v52 = vmul.f32 %v2168_v3, %v1076_v14  ;;  %778 = vadd.xlane.f32.xlu0 %v754_v21  ;;  %vm1096_vm7 = vcmp.eq.f32.partialorder %v3116_v56, 0.0  ;;  %v907_v34 = vmul.f32 %v2243_v8, %v2972_v30 }
 0x171   : > { %v909_v14 = vmul.f32 %v2244_v60, %v2972_v30 }
 0x172   : > { %v863_v48 = vpop.f32.mrf.mxu2  ;;  %v1071_v62 = vsel %vm1070_vm2, %v3080_v6, %v1069_v11  ;;  %v1078_v57 = vmul.f32 0.5, %v1077_v52  ;;  %782 = vadd.xlane.f32.xlu2 %v756_v31 }
 0x173   : > { %v887_v45 = vmul.f32 %v863_v48, %v863_v48  ;;  %v1074_v20 = vsel %vm1072_vm3, %v1073_v43, %v1071_v62  ;;  %v2245_v43 = vld [vmem:[%s2653_s29 + $0x28] sm:$0xff] }
 0x174   : > { %1222 = vmatmul.f32.gmra.mxu3 %v1074_v20  ;;  %v705_v26 = vpop.f32.mrf.mxu1  ;;  %v1079_v7 = vsub.f32 1.5, %v1078_v57  ;;  %786 = vadd.xlane.f32.xlu1 %v758_v35  ;;  %v908_v48 = vmul.f32 %v2245_v43, %v2972_v30  ;;  %v2255_v43 = vld [vmem:[%s2653_s29 + $0x118] sm:$0xff] }
 0x175   : > { %v2170_v44 = vpop.eup %2169  ;;  %v3136_v61 = vadd.f32 %v887_v45, %v742_v28  ;;  %v727_v6 = vmul.f32 %v705_v26, %v705_v26  ;;  %1299 = vmatmul.f32.gmra.mxu0 %v465_v59  ;;  %v467_v45 = vld [vmem:[%s2646_s10 + $0x78] sm:$0xff]  ;;  %v2247_v59 = vld [vmem:[%s2653_s29 + $0x70] sm:$0xff] }
 0x176   : > { %v1080_v27 = vmul.f32 %v2168_v3, %v1079_v7  ;;  %v1088_v50 = vmul.f32 %v2170_v44, %v3116_v56 }
 0x177   : > { %2171 = vrsqrt.f32 %v3136_v61  ;;  %v743_v1 = vadd.f32 %v727_v6, %v579_v33  ;;  %vm1106_vm8 = vcmp.eq.f32.partialorder %v3136_v61, inf  ;;  %v1109_v26 = vand.u32 2147483648, %v3136_v61 }
 0x178   : > { %v1081_v38 = vmul.f32 %v1080_v27, %v3098_v17  ;;  %v1089_v51 = vmul.f32 %v2170_v44, %v1088_v50  ;;  %784 = vadd.xlane.f32.xlu0 %v757_v0  ;;  %vm1108_vm9 = vcmp.eq.f32.partialorder %v3136_v61, 0.0  ;;  %v2246_v27 = vld [vmem:[%s2653_s29 + $0x58] sm:$0xff] }
 0x179   : > { %v910_v50 = vmul.f32 %v2246_v27, %v2972_v30 }
 0x17a   : > { %v866_v23 = vpop.f32.mrf.mxu2  ;;  %v1083_v15 = vsel %vm1082_vm4, %v3098_v17, %v1081_v38  ;;  %v1090_v54 = vmul.f32 0.5, %v1089_v51  ;;  %788 = vadd.xlane.f32.xlu2 %v759_v40 }
 0x17b   : > { %v888_v58 = vmul.f32 %v866_v23, %v866_v23  ;;  %v1086_v2 = vsel %vm1084_vm5, %v1085_v42, %v1083_v15 }
 0x17c   : > { %1225 = vmatmul.f32.gmra.mxu3 %v1086_v2  ;;  %v708_v46 = vpop.f32.mrf.mxu1  ;;  %v1091_v63 = vsub.f32 1.5, %v1090_v54  ;;  %792 = vadd.xlane.f32.xlu1 %v761_v9 }
 0x17d   : > { %v2172_v12 = vpop.eup %2171  ;;  %v3152_v37 = vadd.f32 %v888_v58, %v743_v1  ;;  %v728_v17 = vmul.f32 %v708_v46, %v708_v46  ;;  %1302 = vmatmul.f32.gmra.mxu0 %v466_v4  ;;  %v911_v1 = vmul.f32 %v2247_v59, %v2972_v30 }
 0x17e   : > { %v1092_v25 = vmul.f32 %v2170_v44, %v1091_v63  ;;  %v1100_v19 = vmul.f32 %v2172_v12, %v3136_v61 }
 0x17f   : > { %2173 = vrsqrt.f32 %v3152_v37  ;;  %v744_v55 = vadd.f32 %v728_v17, %v580_v41  ;;  %vm1118_vm10 = vcmp.eq.f32.partialorder %v3152_v37, inf  ;;  %v1121_v15 = vand.u32 2147483648, %v3152_v37  ;;  %v2249_v17 = vld [vmem:[%s2653_s29 + $0x88] sm:$0xff] }
 0x180   : > { %v1093_v22 = vmul.f32 %v1092_v25, %v3116_v56  ;;  %v1101_v10 = vmul.f32 %v2172_v12, %v1100_v19  ;;  %790 = vadd.xlane.f32.xlu0 %v760_v39  ;;  %v3186_v23 = vpop.f32.mrf.mxu0  ;;  %vm1120_vm11 = vcmp.eq.f32.partialorder %v3152_v37, 0.0  ;;  %v912_v25 = vmul.f32 %v2249_v17, %v2972_v30  ;;  %v2250_v19 = vld [vmem:[%s2653_s29 + $0xb8] sm:$0xff] }
 0x181   : > { %v914_v39 = vmul.f32 %v2250_v19, %v2972_v30 }
 0x182   : > { %v869_v53 = vpop.f32.mrf.mxu2  ;;  %v1095_v29 = vsel %vm1094_vm6, %v3116_v56, %v1093_v22  ;;  %v1102_v24 = vmul.f32 0.5, %v1101_v10  ;;  %v581_v56 = vmul.f32 %v563_v16, %v563_v16  ;;  %923 = vadd.xlane.f32.xlu2 %v907_v34 }
 0x183   : > { %v889_v5 = vmul.f32 %v869_v53, %v869_v53  ;;  %v1098_v3 = vsel %vm1096_vm7, %v1097_v18, %v1095_v29 }
 0x184   : > { %1228 = vmatmul.f32.gmra.mxu3 %v1098_v3  ;;  %v711_v13 = vpop.f32.mrf.mxu1  ;;  %v1103_v32 = vsub.f32 1.5, %v1102_v24  ;;  %927 = vadd.xlane.f32.xlu1 %v909_v14  ;;  %v2251_v24 = vld [vmem:[%s2653_s29 + $0xe8] sm:$0xff]  ;;  %v2252_v3 = vld [vmem:[%s2653_s29 + $0xd0] sm:$0xff] }
 0x185   : > { %v2174_v21 = vpop.eup %2173  ;;  %v3168_v11 = vadd.f32 %v889_v5, %v744_v55  ;;  %v729_v52 = vmul.f32 %v711_v13, %v711_v13  ;;  %1305 = vmatmul.f32.gmra.mxu0 %v467_v45  ;;  %v916_v5 = vmul.f32 %v2251_v24, %v2972_v30  ;;  %v915_v13 = vmul.f32 %v2252_v3, %v2972_v30 }
 0x186   : > { %v1104_v36 = vmul.f32 %v2172_v12, %v1103_v32  ;;  %v1112_v28 = vmul.f32 %v2174_v21, %v3152_v37  ;;  %v2248_v12 = vld [vmem:[%s2653_s29 + $0xa0] sm:$0xff] }
 0x187   : > { %2175 = vrsqrt.f32 %v3168_v11  ;;  %v745_v20 = vadd.f32 %v729_v52, %v581_v56  ;;  %v913_v41 = vmul.f32 %v2248_v12, %v2972_v30  ;;  %vm1130_vm12 = vcmp.eq.f32.partialorder %v3168_v11, inf  ;;  %v2253_v32 = vld [vmem:[%s2653_s29 + $0x100] sm:$0xff] }
 0x188   : > { %v1105_v62 = vmul.f32 %v1104_v36, %v3136_v61  ;;  %v1113_v57 = vmul.f32 %v2174_v21, %v1112_v28  ;;  %925 = vadd.xlane.f32.xlu0 %v908_v48  ;;  %v1264_v10 = vpop.f32.mrf.mxu0  ;;  %v1133_v4 = vand.u32 2147483648, %v3168_v11  ;;  %vm1132_vm13 = vcmp.eq.f32.partialorder %v3168_v11, 0.0  ;;  %v2254_v36 = vld [vmem:[%s2653_s29 + $0x130] sm:$0xff] }
 0x189   : > { %v917_v8 = vmul.f32 %v2253_v32, %v2972_v30  ;;  %v919_v28 = vmul.f32 %v2254_v36, %v2972_v30  ;;  %v918_v48 = vmul.f32 %v2255_v43, %v2972_v30 }
 0x18a   : > { %v872_v7 = vpop.f32.mrf.mxu2  ;;  %v1107_v31 = vsel %vm1106_vm8, %v3136_v61, %v1105_v62  ;;  %v1114_v35 = vmul.f32 0.5, %v1113_v57  ;;  %929 = vadd.xlane.f32.xlu2 %v910_v50  ;;  %v2256_v62 = vld [vmem:[%s2653_s29 + $0x148] sm:$0xff]  ;;  %vm1721_vm8 = vcmask 7168  }
 0x18b   : > { %v890_v44 = vmul.f32 %v872_v7, %v872_v7  ;;  %v1110_v33 = vsel %vm1108_vm9, %v1109_v26, %v1107_v31  ;;  %v920_v57 = vmul.f32 %v2256_v62, %v2972_v30  ;;  %v3228_v31 = vld [vmem:[%s3652_s6] ss:$0 sm:$0xff] }
 0x18c   : > { %1231 = vmatmul.f32.gmra.mxu3 %v1110_v33  ;;  %v1115_v6 = vsub.f32 1.5, %v1114_v35  ;;  %933 = vadd.xlane.f32.xlu1 %v912_v25  ;;  %v922_v35 = vmul.f32 %v2972_v30, %v2947_v49 }
 0x18d   : > { %v2176_v0 = vpop.eup %2175  ;;  %v906_v38 = vadd.f32 %v890_v44, %v745_v20  ;;  %v2257_v44 = vld [vmem:[%s2653_s29 + $0x160] sm:$0xff] }
 0x18e   : > { %v1116_v47 = vmul.f32 %v2174_v21, %v1115_v6  ;;  %v1124_v51 = vmul.f32 %v2176_v0, %v3168_v11  ;;  %v921_v33 = vmul.f32 %v2257_v44, %v2972_v30 }
 0x18f   : > { %2177 = vrsqrt.f32 %v906_v38  ;;  %vm1142_vm14 = vcmp.eq.f32.partialorder %v906_v38, inf  ;;  %v1145_v60 = vand.u32 2147483648, %v906_v38  ;;  %vm1144_vm15 = vcmp.eq.f32.partialorder %v906_v38, 0.0 }
 0x190   : > { %v1117_v61 = vmul.f32 %v1116_v47, %v3152_v37  ;;  %v1125_v42 = vmul.f32 %v2176_v0, %v1124_v51  ;;  %931 = vadd.xlane.f32.xlu0 %v911_v1 }
 0x191   : > { %v1267_v21 = vpop.f32.mrf.mxu0 }
 0x192   : > { %v1119_v54 = vsel %vm1118_vm10, %v3152_v37, %v1117_v61  ;;  %v1126_v58 = vmul.f32 0.5, %v1125_v42  ;;  %935 = vadd.xlane.f32.xlu2 %v913_v41 }
 0x193   : > { %v1122_v2 = vsel %vm1120_vm11, %v1121_v15, %v1119_v54 }
 0x194   : > { %1234 = vmatmul.f32.gmra.mxu3 %v1122_v2  ;;  %v1127_v46 = vsub.f32 1.5, %v1126_v58  ;;  %939 = vadd.xlane.f32.xlu1 %v915_v13 }
 0x195   : > { %v2178_v63 = vpop.eup %2177 }
 0x196   : > { %v1128_v40 = vmul.f32 %v2176_v0, %v1127_v46  ;;  %v1136_v9 = vmul.f32 %v2178_v63, %v906_v38 }
 0x198   : > { %v1129_v37 = vmul.f32 %v1128_v40, %v3168_v11  ;;  %v1137_v22 = vmul.f32 %v2178_v63, %v1136_v9  ;;  %937 = vadd.xlane.f32.xlu0 %v914_v39 }
 0x19a   : > { %v1131_v55 = vsel %vm1130_vm12, %v3168_v11, %v1129_v37  ;;  %v1138_v18 = vmul.f32 0.5, %v1137_v22  ;;  %941 = vadd.xlane.f32.xlu2 %v916_v5 }
 0x19b   : > { %v1134_v53 = vsel %vm1132_vm13, %v1133_v4, %v1131_v55 }
 0x19c   : > { %1237 = vmatmul.f32.gmra.mxu3 %v1134_v53  ;;  %v1139_v29 = vsub.f32 1.5, %v1138_v18  ;;  %945 = vadd.xlane.f32.xlu1 %v918_v48 }
 0x19d   : > { %v3211_v52 = vpop.xlane.xlu0 %601 }
 0x19e   : > { %v1140_v16 = vmul.f32 %v2178_v63, %v1139_v29 }
 0x19f   : > { %v3209_v56 = vpop.xlane.xlu1 %605 }
 0x1a0   : > { %v1141_v34 = vmul.f32 %v1140_v16, %v906_v38  ;;  %943 = vadd.xlane.f32.xlu0 %v917_v8 }
 0x1a2   : > { %v1143_v14 = vsel %vm1142_vm14, %v906_v38, %v1141_v34  ;;  %947 = vadd.xlane.f32.xlu2 %v919_v28  ;;  %v1270_v26 = vpop.f32.mrf.mxu0 }
 0x1a3   : > { %v1146_v11 = vsel %vm1144_vm15, %v1145_v60, %v1143_v14 }
 0x1a4   : > { %1240 = vmatmul.f32.gmra.mxu3 %v1146_v11  ;;  %951 = vadd.xlane.f32.xlu1 %v921_v33 }
 0x1a5   : > { %v3219_v45 = vpop.xlane.xlu2 %609 }
 0x1a7   : > { %v3221_v20 = vpop.xlane.xlu1 %607 }
 0x1a8   : > { %949 = vadd.xlane.f32.xlu0 %v920_v57  ;;  %v3282_v57 = vld [vmem:[%s3653_s7] ss:$0 sm:$0xff] }
 0x1aa   : > { %953 = vadd.xlane.f32.xlu2 %v922_v35  ;;  %v1273_v1 = vpop.f32.mrf.mxu0 }
 0x1ab   : > { %v3223_v7 = vpop.xlane.xlu0 %603 }
 0x1ad   : > { %v3238_v0 = vpop.xlane.xlu2 %611 }
 0x1af   : > { %v1196_v6 = vpop.f32.mrf.mxu3  ;;  %v3240_v38 = vpop.xlane.xlu1 %615 }
 0x1b0   : > { %v1262_v27 = vadd.f32 %v3186_v23, %v1196_v6 }
 0x1b2   : > { %v3236_v50 = vadd.f32 %v3228_v31, %v1262_v27  ;;  %v3255_v9 = vpop.f32.mrf.mxu0 }
 0x1b3   : > { %v3243_v51 = vpop.xlane.xlu0 %613 }
 0x1b4   : > { %v1329_v47 = vsub.f32 0.0, %v3236_v50 }
 0x1b5   : > { %v3248_v42 = vpop.xlane.xlu2 %617 }
 0x1b6   : > { %v1345_v49 = vmul.f32 1.442695, %v1329_v47 }
 0x1b7   : > { %v1199_v59 = vpop.f32.mrf.mxu3  ;;  %v3250_v23 = vpop.xlane.xlu1 %621 }
 0x1b8   : > { %2179 = vpow2.f32 %v1345_v49  ;;  %v1265_v30 = vadd.f32 %v1264_v10, %v1199_v59 }
 0x1ba   : > { %v3246_v61 = vadd.f32 %v3228_v31, %v1265_v30  ;;  %v3270_v5 = vpop.f32.mrf.mxu0 }
 0x1bb   : > { %v3253_v54 = vpop.xlane.xlu0 %619 }
 0x1bc   : > { %v1330_v15 = vsub.f32 0.0, %v3246_v61 }
 0x1bd   : > { %v3260_v41 = vpop.xlane.xlu2 %623 }
 0x1be   : > { %v2180_v58 = vpop.eup %2179  ;;  %v1347_v2 = vmul.f32 1.442695, %v1330_v15 }
 0x1bf   : > { %v1377_v46 = vadd.f32 1.0, %v2180_v58  ;;  %v1202_v63 = vpop.f32.mrf.mxu3  ;;  %v3262_v17 = vpop.xlane.xlu1 %627 }
 0x1c0   : > { %2181 = vpow2.f32 %v1347_v2  ;;  %v1268_v40 = vadd.f32 %v1267_v21, %v1202_v63 }
 0x1c1   : > { %2183 = vrcp.f32 %v1377_v46  ;;  %v1402_v16 = vand.u32 2147483647, %v1377_v46  ;;  %v1404_v24 = vand.u32 2147483648, %v1377_v46  ;;  %vm1398_vm1 = vweird.f32 %v1377_v46 }
 0x1c2   : > { %v3258_v12 = vadd.f32 %v3228_v31, %v1268_v40  ;;  %v3291_v58 = vpop.f32.mrf.mxu0 }
 0x1c3   : > { %v3265_v19 = vpop.xlane.xlu0 %625  ;;  %vm1403_vm3 = vcmp.eq.f32.partialorder %v1402_v16, 8.507059e+37  ;;  %v1405_v43 = vor.u32 1.1754944e-38, %v1404_v24 }
 0x1c4   : > { %v1331_v25 = vsub.f32 0.0, %v3258_v12 }
 0x1c5   : > { %v3273_v32 = vpop.xlane.xlu2 %629 }
 0x1c6   : > { %v2182_v39 = vpop.eup %2181  ;;  %v1349_v37 = vmul.f32 1.442695, %v1331_v25 }
 0x1c7   : > { %v2184_v22 = vpop.eup %2183  ;;  %v1378_v10 = vadd.f32 1.0, %v2182_v39  ;;  %v1205_v4 = vpop.f32.mrf.mxu3 }
 0x1c8   : > { %2185 = vpow2.f32 %v1349_v37  ;;  %v1271_v55 = vadd.f32 %v1270_v26, %v1205_v4  ;;  %v1394_v18 = vmul.f32 %v2184_v22, %v1377_v46  ;;  %vm1399_vm0 = vweird.f32 %v2184_v22  ;;  %v763_v8 = vpop.xlane.xlu1 %762 }
 0x1c9   : > { %2187 = vrcp.f32 %v1378_v10  ;;  %vm1400_vm2 = vmor %vm1398_vm1, %vm1399_vm0  ;;  %v1417_v27 = vand.u32 2147483647, %v1378_v10  ;;  %v1419_v47 = vand.u32 2147483648, %v1378_v10  ;;  %vm1413_vm5 = vweird.f32 %v1378_v10 }
 0x1ca   : > { %v3268_v53 = vadd.f32 %v3228_v31, %v1271_v55  ;;  %v1395_v29 = vsub.f32 1.0, %v1394_v18  ;;  %v3304_v24 = vsel %vm1721_vm8, %v3211_v52, %v763_v8 }
 0x1cb   : > { %v3275_v34 = vpop.xlane.xlu0 %631  ;;  %vm1418_vm7 = vcmp.eq.f32.partialorder %v1417_v27, 8.507059e+37  ;;  %v1420_v37 = vor.u32 1.1754944e-38, %v1419_v47 }
 0x1cc   : > { %v1332_v3 = vsub.f32 0.0, %v3268_v53  ;;  %v1396_v13 = vmul.f32 %v2184_v22, %v1395_v29 }
 0x1cd   : > { %v765_v30 = vpop.xlane.xlu2 %764 }
 0x1ce   : > { %v2186_v60 = vpop.eup %2185  ;;  %v1351_v14 = vmul.f32 1.442695, %v1332_v3  ;;  %v1397_v21 = vadd.f32 %v2184_v22, %v1396_v13 }
 0x1cf   : > { %v2188_v11 = vpop.eup %2187  ;;  %v3277_v36 = vadd.f32 1.0, %v2186_v60  ;;  %v1208_v28 = vpop.f32.mrf.mxu3 }
 0x1d0   : > { %2189 = vpow2.f32 %v1351_v14  ;;  %v1274_v48 = vadd.f32 %v1273_v1, %v1208_v28  ;;  %v1401_v62 = vsel %vm1400_vm2, %v2184_v22, %v1397_v21  ;;  %v1409_v26 = vmul.f32 %v2188_v11, %v1378_v10  ;;  %v769_v15 = vpop.xlane.xlu1 %768 }
 0x1d1   : > { %2191 = vrcp.f32 %v3277_v36  ;;  %v1406_v35 = vsel %vm1403_vm3, %v1405_v43, %v1401_v62  ;;  %vm1414_vm4 = vweird.f32 %v2188_v11  ;;  %v1432_v3 = vand.u32 2147483647, %v3277_v36 }
 0x1d2   : > { %v3286_v44 = vadd.f32 %v3228_v31, %v1274_v48  ;;  %v1633_v33 = vmul.f32 %v1406_v35, %v3236_v50  ;;  %v1410_v6 = vsub.f32 1.0, %v1409_v26  ;;  %vm1415_vm6 = vmor %vm1413_vm5, %vm1414_vm4  ;;  %vm1428_vm10 = vweird.f32 %v3277_v36  ;;  %v3313_v35 = vpop.f32.mrf.mxu0 }
 0x1d3   : > { %v767_v2 = vpop.xlane.xlu0 %766  ;;  %vm1433_vm12 = vcmp.eq.f32.partialorder %v1432_v3, 8.507059e+37 }
 0x1d4   : > { %v1333_v49 = vsub.f32 0.0, %v3286_v44  ;;  %v1653_v59 = vmul.f32 %v3282_v57, %v1633_v33  ;;  %v1411_v1 = vmul.f32 %v2188_v11, %v1410_v6 }
 0x1d5   : > { %v771_v21 = vpop.xlane.xlu2 %770 }
 0x1d6   : > { %v2190_v46 = vpop.eup %2189  ;;  %v1353_v63 = vmul.f32 1.442695, %v1333_v49  ;;  %1669 = vadd.xlane.f32.xlu0 %v1653_v59  ;;  %v1412_v40 = vadd.f32 %v2188_v11, %v1411_v1 }
 0x1d7   : > { %v2192_v50 = vpop.eup %2191  ;;  %v3293_v25 = vadd.f32 1.0, %v2190_v46  ;;  %v1211_v39 = vpop.f32.mrf.mxu3  ;;  %v3328_v46 = vsel %vm1721_vm8, %v3221_v20, %v769_v15 }
 0x1d8   : > { %2193 = vpow2.f32 %v1353_v63  ;;  %v1277_v22 = vadd.f32 %v3255_v9, %v1211_v39  ;;  %v1416_v4 = vsel %vm1415_vm6, %v2188_v11, %v1412_v40  ;;  %v1424_v55 = vmul.f32 %v2192_v50, %v3277_v36  ;;  %v775_v11 = vpop.xlane.xlu1 %774 }
 0x1d9   : > { %2195 = vrcp.f32 %v3293_v25  ;;  %v1421_v18 = vsel %vm1418_vm7, %v1420_v37, %v1416_v4  ;;  %v1434_v9 = vand.u32 2147483648, %v3277_v36  ;;  %vm1429_vm9 = vweird.f32 %v2192_v50 }
 0x1da   : > { %v3299_v29 = vadd.f32 %v3228_v31, %v1277_v22  ;;  %v1634_v10 = vmul.f32 %v1421_v18, %v3246_v61  ;;  %v1425_v16 = vsub.f32 1.0, %v1424_v55  ;;  %vm1430_vm11 = vmor %vm1428_vm10, %vm1429_vm9  ;;  %v3320_v36 = vsel %vm1721_vm8, %v3223_v7, %v765_v30 }
 0x1db   : > { %v773_v28 = vpop.xlane.xlu0 %772  ;;  %v1435_v26 = vor.u32 1.1754944e-38, %v1434_v9  ;;  %v1449_v63 = vand.u32 2147483648, %v3293_v25  ;;  %v3334_v40 = vsel %vm1721_vm8, %v3209_v56, %v767_v2  ;;  %vm1443_vm14 = vweird.f32 %v3293_v25  ;;  %v1288_v9 = vpop.f32.mrf.mxu0 }
 0x1dc   : > { %v1334_v13 = vsub.f32 0.0, %v3299_v29  ;;  %v1654_v60 = vmul.f32 %v3282_v57, %v1634_v10  ;;  %v1426_v14 = vmul.f32 %v2192_v50, %v1425_v16 }
 0x1dd   : > { %v1450_v2 = vor.u32 1.1754944e-38, %v1449_v63 }
 0x1de   : > { %v2194_v43 = vpop.eup %2193  ;;  %v1355_v61 = vmul.f32 1.442695, %v1334_v13  ;;  %1671 = vadd.xlane.f32.xlu1 %v1654_v60  ;;  %v1427_v48 = vadd.f32 %v2192_v50, %v1426_v14 }
 0x1df   : > { %v2196_v52 = vpop.eup %2195  ;;  %v3311_v8 = vadd.f32 1.0, %v2194_v43  ;;  %v1214_v62 = vpop.f32.mrf.mxu3 }
 0x1e0   : > { %2197 = vpow2.f32 %v1355_v61  ;;  %v1280_v33 = vadd.f32 %v3270_v5, %v1214_v62  ;;  %v1431_v6 = vsel %vm1430_vm11, %v2192_v50, %v1427_v48  ;;  %v1439_v27 = vmul.f32 %v2196_v52, %v3293_v25  ;;  %v781_v39 = vpop.xlane.xlu1 %780 }
 0x1e1   : > { %2199 = vrcp.f32 %v3311_v8  ;;  %v1436_v47 = vsel %vm1433_vm12, %v1435_v26, %v1431_v6  ;;  %v1447_v5 = vand.u32 2147483647, %v3293_v25  ;;  %vm1444_vm13 = vweird.f32 %v2196_v52 }
 0x1e2   : > { %v3323_v49 = vadd.f32 %v3228_v31, %v1280_v33  ;;  %v1635_v59 = vmul.f32 %v1436_v47, %v3258_v12  ;;  %v1440_v1 = vsub.f32 1.0, %v1439_v27  ;;  %v777_v12 = vpop.xlane.xlu2 %776  ;;  %vm1445_vm15 = vmor %vm1443_vm14, %vm1444_vm13  ;;  %v3346_v25 = vsel %vm1721_vm8, %v3219_v45, %v771_v21 }
 0x1e3   : > { %v779_v37 = vpop.xlane.xlu0 %778  ;;  %vm1448_vm0 = vcmp.eq.f32.partialorder %v1447_v5, 8.507059e+37  ;;  %v1462_v43 = vand.u32 2147483647, %v3311_v8  ;;  %v1464_v61 = vand.u32 2147483648, %v3311_v8  ;;  %v3360_v48 = vsel %vm1721_vm8, %v3238_v0, %v773_v28 }
 0x1e4   : > { %v1335_v7 = vsub.f32 0.0, %v3323_v49  ;;  %v1655_v30 = vmul.f32 %v3282_v57, %v1635_v59  ;;  %v1441_v50 = vmul.f32 %v2196_v52, %v1440_v1  ;;  %vm1458_vm2 = vweird.f32 %v3311_v8 }
 0x1e5   : > { %vm1463_vm4 = vcmp.eq.f32.partialorder %v1462_v43, 8.507059e+37  ;;  %v1465_v28 = vor.u32 1.1754944e-38, %v1464_v61  ;;  %v3372_v63 = vsel %vm1721_vm8, %v3240_v38, %v777_v12  ;;  %vm1738_vm11 = vcmask 15360  }
 0x1e6   : > { %v2198_v22 = vpop.eup %2197  ;;  %v1357_v20 = vmul.f32 1.442695, %v1335_v7  ;;  %1673 = vadd.xlane.f32.xlu2 %v1655_v30  ;;  %v1442_v15 = vadd.f32 %v2196_v52, %v1441_v50  ;;  %v3380_v50 = vsel %vm1721_vm8, %v3253_v54, %v781_v39 }
 0x1e7   : > { %v2200_v4 = vpop.eup %2199  ;;  %v3339_v55 = vadd.f32 1.0, %v2198_v22  ;;  %v1217_v56 = vpop.f32.mrf.mxu3 }
 0x1e8   : > { %2201 = vpow2.f32 %v1357_v20  ;;  %v1283_v18 = vadd.f32 %v3291_v58, %v1217_v56  ;;  %v1446_v10 = vsel %vm1445_vm15, %v2196_v52, %v1442_v15  ;;  %v1454_v16 = vmul.f32 %v2200_v4, %v3311_v8  ;;  %v787_v62 = vpop.xlane.xlu1 %786  ;;  %v1291_v20 = vpop.f32.mrf.mxu0 }
 0x1e9   : > { %2203 = vrcp.f32 %v3339_v55  ;;  %v1451_v3 = vsel %vm1448_vm0, %v1450_v2, %v1446_v10  ;;  %v3354_v58 = vsel %vm1721_vm8, %v3243_v51, %v775_v11  ;;  %vm1459_vm1 = vweird.f32 %v2200_v4 }
 0x1ea   : > { %v3349_v13 = vadd.f32 %v3228_v31, %v1283_v18  ;;  %v1636_v60 = vmul.f32 %v1451_v3, %v3268_v53  ;;  %v1455_v14 = vsub.f32 1.0, %v1454_v16  ;;  %v783_v53 = vpop.xlane.xlu2 %782  ;;  %vm1460_vm3 = vmor %vm1458_vm2, %vm1459_vm1  ;;  %v1479_v22 = vand.u32 2147483648, %v3339_v55 }
 0x1eb   : > { %v785_v26 = vpop.xlane.xlu0 %784  ;;  %v3386_v15 = vsel %vm1721_vm8, %v3248_v42, %v779_v37  ;;  %vm1473_vm6 = vweird.f32 %v3339_v55  ;;  %v3397_v61 = vsel %vm1721_vm8, %v3250_v23, %v783_v53 }
 0x1ec   : > { %v1336_v45 = vsub.f32 0.0, %v3349_v13  ;;  %v1656_v21 = vmul.f32 %v3282_v57, %v1636_v60  ;;  %v1456_v52 = vmul.f32 %v2200_v4, %v1455_v14  ;;  %v1480_v37 = vor.u32 1.1754944e-38, %v1479_v22 }
 0x1ee   : > { %v2202_v33 = vpop.eup %2201  ;;  %v1359_v51 = vmul.f32 1.442695, %v1336_v45  ;;  %1675 = vadd.xlane.f32.xlu0 %v1656_v21  ;;  %v1457_v11 = vadd.f32 %v2200_v4, %v1456_v52  ;;  %v3405_v52 = vsel %vm1721_vm8, %v3265_v19, %v787_v62 }
 0x1ef   : > { %v2204_v6 = vpop.eup %2203  ;;  %v3365_v27 = vadd.f32 1.0, %v2202_v33  ;;  %v1220_v0 = vpop.f32.mrf.mxu3 }
 0x1f0   : > { %2205 = vpow2.f32 %v1359_v51  ;;  %v1286_v47 = vadd.f32 %v3313_v35, %v1220_v0  ;;  %v1461_v59 = vsel %vm1460_vm3, %v2200_v4, %v1457_v11  ;;  %v1469_v1 = vmul.f32 %v2204_v6, %v3339_v55  ;;  %v793_v56 = vpop.xlane.xlu1 %792  ;;  %v1294_v0 = vpop.f32.mrf.mxu0 }
 0x1f1   : > { %2207 = vrcp.f32 %v3365_v27  ;;  %v1466_v5 = vsel %vm1463_vm4, %v1465_v28, %v1461_v59  ;;  %v1477_v35 = vand.u32 2147483647, %v3339_v55  ;;  %vm1474_vm5 = vweird.f32 %v2204_v6 }
 0x1f2   : > { %v3375_v8 = vadd.f32 %v3228_v31, %v1286_v47  ;;  %v1637_v7 = vmul.f32 %v1466_v5, %v3286_v44  ;;  %v1470_v30 = vsub.f32 1.0, %v1469_v1  ;;  %v789_v44 = vpop.xlane.xlu2 %788  ;;  %vm1475_vm7 = vmor %vm1473_vm6, %vm1474_vm5  ;;  %v1494_v33 = vand.u32 2147483648, %v3365_v27 }
 0x1f3   : > { %v791_v2 = vpop.xlane.xlu0 %790  ;;  %vm1478_vm9 = vcmp.eq.f32.partialorder %v1477_v35, 8.507059e+37  ;;  %v3411_v51 = vsel %vm1721_vm8, %v3260_v41, %v785_v26  ;;  %vm1488_vm12 = vweird.f32 %v3365_v27  ;;  %v3431_v22 = vsel %vm1721_vm8, %v3262_v17, %v789_v44 }
 0x1f4   : > { %v1337_v38 = vsub.f32 0.0, %v3375_v8  ;;  %v1657_v12 = vmul.f32 %v3282_v57, %v1637_v7  ;;  %v1471_v4 = vmul.f32 %v2204_v6, %v1470_v30  ;;  %v1495_v7 = vor.u32 1.1754944e-38, %v1494_v33 }
 0x1f6   : > { %v2206_v54 = vpop.eup %2205  ;;  %v1361_v39 = vmul.f32 1.442695, %v1337_v38  ;;  %1677 = vadd.xlane.f32.xlu1 %v1657_v12  ;;  %v1472_v18 = vadd.f32 %v2204_v6, %v1471_v4  ;;  %v3439_v4 = vsel %vm1721_vm8, %v3275_v34, %v793_v56 }
 0x1f7   : > { %v2208_v10 = vpop.eup %2207  ;;  %v3391_v16 = vadd.f32 1.0, %v2206_v54  ;;  %v1223_v42 = vpop.f32.mrf.mxu3 }
 0x1f8   : > { %2209 = vpow2.f32 %v1361_v39  ;;  %v1289_v3 = vadd.f32 %v1288_v9, %v1223_v42  ;;  %v1476_v60 = vsel %vm1475_vm7, %v2204_v6, %v1472_v18  ;;  %v1484_v14 = vmul.f32 %v2208_v10, %v3365_v27  ;;  %v928_v6 = vpop.xlane.xlu1 %927 }
 0x1f9   : > { %2211 = vrcp.f32 %v3391_v16  ;;  %v1481_v43 = vsel %vm1478_vm9, %v1480_v37, %v1476_v60  ;;  %vm1489_vm10 = vweird.f32 %v2208_v10  ;;  %v1492_v9 = vand.u32 2147483647, %v3365_v27 }
 0x1fa   : > { %v3400_v55 = vadd.f32 %v3228_v31, %v1289_v3  ;;  %v1638_v45 = vmul.f32 %v1481_v43, %v3299_v29  ;;  %v1485_v21 = vsub.f32 1.0, %v1484_v14  ;;  %v924_v29 = vpop.xlane.xlu2 %923  ;;  %v3421_v28 = vsel %vm1738_vm11, %v3334_v40, %v928_v6  ;;  %vm1490_vm13 = vmor %vm1488_vm12, %vm1489_vm10  ;;  %v1297_v43 = vpop.f32.mrf.mxu0 }
 0x1fb   : > { %v926_v19 = vpop.xlane.xlu0 %925  ;;  %v3417_v62 = vsel %vm1738_vm11, %v3304_v24, %v924_v29  ;;  %vm1493_vm14 = vcmp.eq.f32.partialorder %v1492_v9, 8.507059e+37  ;;  %v1509_v54 = vand.u32 2147483648, %v3391_v16  ;;  %v3445_v39 = vsel %vm1721_vm8, %v3273_v32, %v791_v2 }
 0x1fc   : > { %v1338_v23 = vsub.f32 0.0, %v3400_v55  ;;  %v1658_v53 = vmul.f32 %v3282_v57, %v1638_v45  ;;  %v1486_v11 = vmul.f32 %v2208_v10, %v1485_v21  ;;  %v3451_v34 = vsel %vm1738_vm11, %v3320_v36, %v926_v19 }
 0x1fd   : > { %vm1503_vm8 = vweird.f32 %v3391_v16  ;;  %v1510_v36 = vor.u32 1.1754944e-38, %v1509_v54 }
 0x1fe   : > { %v2210_v41 = vpop.eup %2209  ;;  %v1363_v26 = vmul.f32 1.442695, %v1338_v23  ;;  %1679 = vadd.xlane.f32.xlu2 %v1658_v53  ;;  %v1487_v47 = vadd.f32 %v2208_v10, %v1486_v11 }
 0x1ff   : > { %v2212_v59 = vpop.eup %2211  ;;  %v3424_v1 = vadd.f32 1.0, %v2210_v41  ;;  %v1226_v5 = vpop.f32.mrf.mxu3 }
 0x200   : > { %2213 = vpow2.f32 %v1363_v26  ;;  %v1292_v24 = vadd.f32 %v1291_v20, %v1226_v5  ;;  %v1491_v30 = vsel %vm1490_vm13, %v2208_v10, %v1487_v47  ;;  %v1499_v40 = vmul.f32 %v2212_v59, %v3391_v16  ;;  %v934_v19 = vpop.xlane.xlu1 %933 }
 0x201   : > { %2215 = vrcp.f32 %v3424_v1  ;;  %v1496_v35 = vsel %vm1493_vm14, %v1495_v7, %v1491_v30  ;;  %v1507_v20 = vand.u32 2147483647, %v3391_v16  ;;  %vm1504_vm15 = vweird.f32 %v2212_v59 }
 0x202   : > { %v3434_v27 = vadd.f32 %v3228_v31, %v1292_v24  ;;  %v1639_v38 = vmul.f32 %v1496_v35, %v3323_v49  ;;  %v1500_v12 = vsub.f32 1.0, %v1499_v40  ;;  %v930_v49 = vpop.xlane.xlu2 %929  ;;  %vm1505_vm0 = vmor %vm1503_vm8, %vm1504_vm15  ;;  %v1522_v23 = vand.u32 2147483647, %v3424_v1 }
 0x203   : > { %v932_v10 = vpop.xlane.xlu0 %931  ;;  %v3455_v56 = vsel %vm1738_vm11, %v3328_v46, %v930_v49  ;;  %vm1508_vm1 = vcmp.eq.f32.partialorder %v1507_v20, 8.507059e+37  ;;  %v1524_v53 = vand.u32 2147483648, %v3424_v1  ;;  %v3476_v26 = vsel %vm1738_vm11, %v3360_v48, %v934_v19 }
 0x204   : > { %v1339_v17 = vsub.f32 0.0, %v3434_v27  ;;  %v1659_v44 = vmul.f32 %v3282_v57, %v1639_v38  ;;  %v1501_v18 = vmul.f32 %v2212_v59, %v1500_v12  ;;  %v3460_v2 = vsel %vm1738_vm11, %v3346_v25, %v932_v10  ;;  %v1300_v12 = vpop.f32.mrf.mxu0 }
 0x205   : > { %vm1518_vm3 = vweird.f32 %v3424_v1  ;;  %vm1523_vm5 = vcmp.eq.f32.partialorder %v1522_v23, 8.507059e+37  ;;  %v1525_v48 = vor.u32 1.1754944e-38, %v1524_v53 }
 0x206   : > { %v2214_v42 = vpop.eup %2213  ;;  %v1365_v37 = vmul.f32 1.442695, %v1339_v17  ;;  %1681 = vadd.xlane.f32.xlu0 %v1659_v44  ;;  %v1502_v32 = vadd.f32 %v2212_v59, %v1501_v18 }
 0x207   : > { %v2216_v3 = vpop.eup %2215  ;;  %v3462_v60 = vadd.f32 1.0, %v2214_v42  ;;  %v1229_v14 = vpop.f32.mrf.mxu3 }
 0x208   : > { %2217 = vpow2.f32 %v1365_v37  ;;  %v1295_v46 = vadd.f32 %v1294_v0, %v1229_v14  ;;  %v1506_v45 = vsel %vm1505_vm0, %v2212_v59, %v1502_v32  ;;  %v1514_v21 = vmul.f32 %v2216_v3, %v3424_v1  ;;  %v940_v37 = vpop.xlane.xlu1 %939 }
 0x209   : > { %2219 = vrcp.f32 %v3462_v60  ;;  %v1511_v16 = vsel %vm1508_vm1, %v1510_v36, %v1506_v45  ;;  %vm1519_vm2 = vweird.f32 %v2216_v3  ;;  %v1537_v17 = vand.u32 2147483647, %v3462_v60 }
 0x20a   : > { %v3467_v9 = vadd.f32 %v3228_v31, %v1295_v46  ;;  %v1640_v25 = vmul.f32 %v1511_v16, %v3349_v13  ;;  %v1515_v33 = vsub.f32 1.0, %v1514_v21  ;;  %v936_v0 = vpop.xlane.xlu2 %935  ;;  %vm1520_vm4 = vmor %vm1518_vm3, %vm1519_vm2  ;;  %v1539_v44 = vand.u32 2147483648, %v3462_v60 }
 0x20b   : > { %v938_v41 = vpop.xlane.xlu0 %937  ;;  %v3480_v13 = vsel %vm1738_vm11, %v3354_v58, %v936_v0  ;;  %vm1533_vm7 = vweird.f32 %v3462_v60  ;;  %vm1538_vm10 = vcmp.eq.f32.partialorder %v1537_v17, 8.507059e+37 }
 0x20c   : > { %v1340_v11 = vsub.f32 0.0, %v3467_v9  ;;  %v1660_v29 = vmul.f32 %v3282_v57, %v1640_v25  ;;  %v1516_v6 = vmul.f32 %v2216_v3, %v1515_v33  ;;  %v3485_v7 = vsel %vm1738_vm11, %v3372_v63, %v938_v41 }
 0x20e   : > { %v2218_v47 = vpop.eup %2217  ;;  %v1367_v59 = vmul.f32 1.442695, %v1340_v11  ;;  %1683 = vadd.xlane.f32.xlu1 %v1660_v29  ;;  %v1517_v5 = vadd.f32 %v2216_v3, %v1516_v6  ;;  %v1303_v11 = vpop.f32.mrf.mxu0 }
 0x20f   : > { %v2220_v24 = vpop.eup %2219  ;;  %v3487_v30 = vadd.f32 1.0, %v2218_v47  ;;  %v1232_v40 = vpop.f32.mrf.mxu3 }
 0x210   : > { %2221 = vpow2.f32 %v1367_v59  ;;  %v1298_v58 = vadd.f32 %v1297_v43, %v1232_v40  ;;  %v1521_v35 = vsel %vm1520_vm4, %v2216_v3, %v1517_v5  ;;  %v1529_v38 = vmul.f32 %v2220_v24, %v3462_v60  ;;  %v946_v59 = vpop.xlane.xlu1 %945 }
 0x211   : > { %2223 = vrcp.f32 %v3487_v30  ;;  %v1526_v1 = vsel %vm1523_vm5, %v1525_v48, %v1521_v35  ;;  %vm1534_vm6 = vweird.f32 %v2220_v24  ;;  %v3502_v3 = vsel %vm1738_vm11, %v3386_v15, %v940_v37 }
 0x212   : > { %v3493_v63 = vadd.f32 %v3228_v31, %v1298_v58  ;;  %v1641_v20 = vmul.f32 %v1526_v1, %v3375_v8  ;;  %v1530_v54 = vsub.f32 1.0, %v1529_v38  ;;  %v942_v42 = vpop.xlane.xlu2 %941  ;;  %vm1535_vm9 = vmor %vm1533_vm7, %vm1534_vm6  ;;  %v1540_v15 = vor.u32 1.1754944e-38, %v1539_v44 }
 0x213   : > { %v944_v32 = vpop.xlane.xlu0 %943  ;;  %v3506_v8 = vsel %vm1738_vm11, %v3380_v50, %v942_v42  ;;  %v1552_v29 = vand.u32 2147483647, %v3487_v30  ;;  %v1554_v6 = vand.u32 2147483648, %v3487_v30  ;;  %vm1548_vm13 = vweird.f32 %v3487_v30 }
 0x214   : > { %v1341_v18 = vsub.f32 0.0, %v3493_v63  ;;  %v1661_v49 = vmul.f32 %v3282_v57, %v1641_v20  ;;  %v1531_v10 = vmul.f32 %v2220_v24, %v1530_v54  ;;  %v3511_v46 = vsel %vm1738_vm11, %v3397_v61, %v944_v32 }
 0x215   : > { %vm1553_vm15 = vcmp.eq.f32.partialorder %v1552_v29, 8.507059e+37 }
 0x216   : > { %v2222_v14 = vpop.eup %2221  ;;  %v1369_v36 = vmul.f32 1.442695, %v1341_v18  ;;  %1685 = vadd.xlane.f32.xlu2 %v1661_v49  ;;  %v1532_v43 = vadd.f32 %v2220_v24, %v1531_v10 }
 0x217   : > { %v2224_v45 = vpop.eup %2223  ;;  %v3513_v21 = vadd.f32 1.0, %v2222_v14  ;;  %v1235_v16 = vpop.f32.mrf.mxu3 }
 0x218   : > { %2225 = vpow2.f32 %v1369_v36  ;;  %v1301_v50 = vadd.f32 %v1300_v12, %v1235_v16  ;;  %v1536_v25 = vsel %vm1535_vm9, %v2220_v24, %v1532_v43  ;;  %v1544_v33 = vmul.f32 %v2224_v45, %v3487_v30  ;;  %v952_v14 = vpop.xlane.xlu1 %951  ;;  %v1306_v36 = vpop.f32.mrf.mxu0 }
 0x219   : > { %2227 = vrcp.f32 %v3513_v21  ;;  %v1541_v60 = vsel %vm1538_vm10, %v1540_v15, %v1536_v25  ;;  %vm1549_vm12 = vweird.f32 %v2224_v45  ;;  %v3528_v24 = vsel %vm1738_vm11, %v3411_v51, %v946_v59 }
 0x21a   : > { %v3519_v23 = vadd.f32 %v3228_v31, %v1301_v50  ;;  %v1642_v61 = vmul.f32 %v1541_v60, %v3400_v55  ;;  %v1545_v53 = vsub.f32 1.0, %v1544_v33  ;;  %v948_v47 = vpop.xlane.xlu2 %947  ;;  %vm1550_vm14 = vmor %vm1548_vm13, %vm1549_vm12  ;;  %v1555_v51 = vor.u32 1.1754944e-38, %v1554_v6 }
 0x21b   : > { %v950_v5 = vpop.xlane.xlu0 %949  ;;  %v3532_v55 = vsel %vm1738_vm11, %v3405_v52, %v948_v47  ;;  %v1567_v18 = vand.u32 2147483647, %v3513_v21  ;;  %v1569_v49 = vand.u32 2147483648, %v3513_v21  ;;  %v3554_v43 = vsel %vm1738_vm11, %v3445_v39, %v952_v14 }
 0x21c   : > { %v1342_v0 = vsub.f32 0.0, %v3519_v23  ;;  %v1662_v19 = vmul.f32 %v3282_v57, %v1642_v61  ;;  %v1546_v41 = vmul.f32 %v2224_v45, %v1545_v53  ;;  %v3537_v35 = vsel %vm1738_vm11, %v3431_v22, %v950_v5 }
 0x21d   : > { %vm1563_vm0 = vweird.f32 %v3513_v21  ;;  %vm1568_vm2 = vcmp.eq.f32.partialorder %v1567_v18, 8.507059e+37  ;;  %v1570_v60 = vor.u32 1.1754944e-38, %v1569_v49 }
 0x21e   : > { %v2226_v40 = vpop.eup %2225  ;;  %v1371_v48 = vmul.f32 1.442695, %v1342_v0  ;;  %1687 = vadd.xlane.f32.xlu0 %v1662_v19  ;;  %v1547_v58 = vadd.f32 %v2224_v45, %v1546_v41 }
 0x21f   : > { %v2228_v38 = vpop.eup %2227  ;;  %v3539_v1 = vadd.f32 1.0, %v2226_v40  ;;  %v1238_v12 = vpop.f32.mrf.mxu3 }
 0x220   : > { %2229 = vpow2.f32 %v1371_v48  ;;  %v1304_v52 = vadd.f32 %v1303_v11, %v1238_v12  ;;  %v1551_v20 = vsel %vm1550_vm14, %v2224_v45, %v1547_v58  ;;  %v1559_v54 = vmul.f32 %v2228_v38, %v3513_v21 }
 0x221   : > { %2231 = vrcp.f32 %v3539_v1  ;;  %v1556_v30 = vsel %vm1553_vm15, %v1555_v51, %v1551_v20  ;;  %vm1564_vm8 = vweird.f32 %v2228_v38  ;;  %v1582_v21 = vand.u32 2147483647, %v3539_v1 }
 0x222   : > { %v3545_v17 = vadd.f32 %v3228_v31, %v1304_v52  ;;  %v1643_v22 = vmul.f32 %v1556_v30, %v3434_v27  ;;  %v1560_v44 = vsub.f32 1.0, %v1559_v54  ;;  %v954_v32 = vpop.xlane.xlu2 %953  ;;  %vm1565_vm1 = vmor %vm1563_vm0, %vm1564_vm8  ;;  %v1584_v0 = vand.u32 2147483648, %v3539_v1 }
 0x223   : > { %v3558_v27 = vsel %vm1738_vm11, %v3439_v4, %v954_v32  ;;  %vm1578_vm3 = vweird.f32 %v3539_v1  ;;  %vm1583_vm5 = vcmp.eq.f32.partialorder %v1582_v21, 8.507059e+37  ;;  %v2463_v54 = vmov 0  }
 0x224   : > { %v1343_v10 = vsub.f32 0.0, %v3545_v17  ;;  %v1663_v42 = vmul.f32 %v3282_v57, %v1643_v22  ;;  %v1561_v37 = vmul.f32 %v2228_v38, %v1560_v44  ;;  %2140 = vset.pattern.permute.xlu1 %v2463_v54  ;;  %2141 = vset.pattern.permute.xlu2 %v2463_v54 }
 0x225   : > { %2142 = vset.pattern.permute.xlu0 %v2463_v54 }
 0x226   : > { %v2230_v45 = vpop.eup %2229  ;;  %v1373_v16 = vmul.f32 1.442695, %v1343_v10  ;;  %1689 = vadd.xlane.f32.xlu1 %v1663_v42  ;;  %v1562_v15 = vadd.f32 %v2228_v38, %v1561_v37 }
 0x227   : > { %v2232_v50 = vpop.eup %2231  ;;  %v1390_v25 = vadd.f32 1.0, %v2230_v45  ;;  %v1241_v33 = vpop.f32.mrf.mxu3 }
 0x228   : > { %2233 = vpow2.f32 %v1373_v16  ;;  %v1307_v61 = vadd.f32 %v1306_v36, %v1241_v33  ;;  %v1566_v39 = vsel %vm1565_vm1, %v2228_v38, %v1562_v15  ;;  %v1574_v53 = vmul.f32 %v2232_v50, %v3539_v1 }
 0x229   : > { %2235 = vrcp.f32 %v1390_v25  ;;  %v1571_v4 = vsel %vm1568_vm2, %v1570_v60, %v1566_v39  ;;  %vm1579_vm11 = vweird.f32 %v2232_v50  ;;  %v1599_v20 = vand.u32 2147483648, %v1390_v25 }
 0x22a   : > { %v3563_v11 = vadd.f32 %v3228_v31, %v1307_v61  ;;  %v1644_v29 = vmul.f32 %v1571_v4, %v3467_v9  ;;  %v1575_v6 = vsub.f32 1.0, %v1574_v53  ;;  %vm1580_vm4 = vmor %vm1578_vm3, %vm1579_vm11  ;;  %v1585_v9 = vor.u32 1.1754944e-38, %v1584_v0 }
 0x22b   : > { %v1597_v22 = vand.u32 2147483647, %v1390_v25  ;;  %vm1593_vm7 = vweird.f32 %v1390_v25  ;;  %v1600_v42 = vor.u32 1.1754944e-38, %v1599_v20  ;;  %vm1851_vm11 = vcmask 23552  }
 0x22c   : > { %v1344_v19 = vsub.f32 0.0, %v3563_v11  ;;  %v1664_v41 = vmul.f32 %v3282_v57, %v1644_v29  ;;  %v1576_v47 = vmul.f32 %v2232_v50, %v1575_v6 }
 0x22d   : > { %vm1598_vm10 = vcmp.eq.f32.partialorder %v1597_v22, 8.507059e+37 }
 0x22e   : > { %v2234_v59 = vpop.eup %2233  ;;  %v1375_v5 = vmul.f32 1.442695, %v1344_v19  ;;  %1691 = vadd.xlane.f32.xlu2 %v1664_v41  ;;  %v1577_v40 = vadd.f32 %v2232_v50, %v1576_v47 }
 0x22f   : > { %v2236_v31 = vpop.eup %2235  ;;  %v1391_v48 = vadd.f32 1.0, %v2234_v59 }
 0x230   : > { %2237 = vpow2.f32 %v1375_v5  ;;  %v1581_v58 = vsel %vm1580_vm4, %v2232_v50, %v1577_v40  ;;  %v1589_v38 = vmul.f32 %v2236_v31, %v1390_v25  ;;  %vm1594_vm6 = vweird.f32 %v2236_v31 }
 0x231   : > { %2239 = vrcp.f32 %v1391_v48  ;;  %v1586_v12 = vsel %vm1583_vm5, %v1585_v9, %v1581_v58  ;;  %vm1595_vm9 = vmor %vm1593_vm7, %vm1594_vm6  ;;  %v1614_v45 = vand.u32 2147483648, %v1391_v48  ;;  %v1612_v50 = vand.u32 2147483647, %v1391_v48 }
 0x232   : > { %v1645_v51 = vmul.f32 %v1586_v12, %v3493_v63  ;;  %v1590_v52 = vsub.f32 1.0, %v1589_v38  ;;  %vm1608_vm13 = vweird.f32 %v1391_v48 }
 0x233   : > { %v1615_v60 = vor.u32 1.1754944e-38, %v1614_v45  ;;  %vm1613_vm15 = vcmp.eq.f32.partialorder %v1612_v50, 8.507059e+37 }
 0x234   : > { %v1665_v30 = vmul.f32 %v3282_v57, %v1645_v51  ;;  %v1591_v1 = vmul.f32 %v2236_v31, %v1590_v52 }
 0x236   : > { %v2238_v44 = vpop.eup %2237  ;;  %1693 = vadd.xlane.f32.xlu0 %v1665_v30  ;;  %v1592_v18 = vadd.f32 %v2236_v31, %v1591_v1 }
 0x237   : > { %v2240_v49 = vpop.eup %2239  ;;  %v1392_v10 = vadd.f32 1.0, %v2238_v44 }
 0x238   : > { %v1596_v63 = vsel %vm1595_vm9, %v2236_v31, %v1592_v18  ;;  %v1604_v37 = vmul.f32 %v2240_v49, %v1391_v48  ;;  %vm1609_vm12 = vweird.f32 %v2240_v49 }
 0x239   : > { %2241 = vrcp.f32 %v1392_v10  ;;  %v1601_v32 = vsel %vm1598_vm10, %v1600_v42, %v1596_v63  ;;  %vm1610_vm14 = vmor %vm1608_vm13, %vm1609_vm12  ;;  %v1629_v29 = vand.u32 2147483648, %v1392_v10  ;;  %v1627_v0 = vand.u32 2147483647, %v1392_v10 }
 0x23a   : > { %v1646_v14 = vmul.f32 %v1601_v32, %v3519_v23  ;;  %v1605_v36 = vsub.f32 1.0, %v1604_v37  ;;  %vm1623_vm0 = vweird.f32 %v1392_v10 }
 0x23b   : > { %v1630_v41 = vor.u32 1.1754944e-38, %v1629_v29  ;;  %vm1628_vm2 = vcmp.eq.f32.partialorder %v1627_v0, 8.507059e+37 }
 0x23c   : > { %v1666_v16 = vmul.f32 %v3282_v57, %v1646_v14  ;;  %v1606_v15 = vmul.f32 %v2240_v49, %v1605_v36 }
 0x23e   : > { %1695 = vadd.xlane.f32.xlu1 %v1666_v16  ;;  %v1607_v25 = vadd.f32 %v2240_v49, %v1606_v15 }
 0x23f   : > { %v2242_v33 = vpop.eup %2241 }
 0x240   : > { %v1611_v61 = vsel %vm1610_vm14, %v2240_v49, %v1607_v25  ;;  %v1619_v39 = vmul.f32 %v2242_v33, %v1392_v10  ;;  %vm1624_vm8 = vweird.f32 %v2242_v33 }
 0x241   : > { %v1616_v53 = vsel %vm1613_vm15, %v1615_v60, %v1611_v61  ;;  %vm1625_vm1 = vmor %vm1623_vm0, %vm1624_vm8 }
 0x242   : > { %v1647_v4 = vmul.f32 %v1616_v53, %v3545_v17  ;;  %v1620_v23 = vsub.f32 1.0, %v1619_v39  ;;  %v2146_v17 = vld [vmem:[#allocation2] ss:$0 sm:$0xff] }
 0x244   : > { %v1667_v6 = vmul.f32 %v3282_v57, %v1647_v4  ;;  %v1621_v21 = vmul.f32 %v2242_v33, %v1620_v23 }
 0x246   : > { %1697 = vadd.xlane.f32.xlu2 %v1667_v6  ;;  %v1622_v19 = vadd.f32 %v2242_v33, %v1621_v21 }
 0x248   : > { %v1626_v47 = vsel %vm1625_vm1, %v2242_v33, %v1622_v19 }
 0x249   : > { %v1631_v59 = vsel %vm1628_vm2, %v1630_v41, %v1626_v47  ;;  %v1670_v31 = vpop.xlane.xlu0 %1669 }
 0x24a   : > { %v1648_v5 = vmul.f32 %v1631_v59, %v3563_v11  ;;  %v1705_v48 = vadd.f32 %v2146_v17, %v1670_v31 }
 0x24c   : > { %v1668_v40 = vmul.f32 %v3282_v57, %v1648_v5 }
 0x24e   : > { %1699 = vadd.xlane.f32.xlu0 %v1668_v40 }
 0x251   : > { %v1672_v9 = vpop.xlane.xlu1 %1671 }
 0x252   : > { %v1706_v58 = vadd.f32 %v2146_v17, %v1672_v9 }
 0x257   : > { %1757 = vperm.xlu1 %2140, %v1705_v48  }
 0x259   : > { %v1674_v38 = vpop.xlane.xlu2 %1673 }
 0x25a   : > { %v1707_v12 = vadd.f32 %v2146_v17, %v1674_v38 }
 0x25e   : > { %1762 = vperm.xlu2 %2141, %v1706_v58  }
 0x261   : > { %v1676_v51 = vpop.xlane.xlu0 %1675 }
 0x262   : > { %1767 = vperm.xlu0 %2142, %v1707_v12   ;;  %v1708_v52 = vadd.f32 %v2146_v17, %v1676_v51 }
 0x266   : > { %1772 = vperm.xlu2 %2141, %v1708_v52  }
 0x269   : > { %v1678_v20 = vpop.xlane.xlu1 %1677 }
 0x26a   : > { %v1709_v54 = vadd.f32 %v2146_v17, %v1678_v20 }
 0x26c   : > { %1777 = vperm.xlu1 %2140, %v1709_v54  }
 0x271   : > { %v1680_v11 = vpop.xlane.xlu2 %1679 }
 0x272   : > { %v1710_v30 = vadd.f32 %v2146_v17, %v1680_v11 }
 0x274   : > { %1782 = vperm.xlu2 %2141, %v1710_v30  }
 0x279   : > { %v1682_v57 = vpop.xlane.xlu0 %1681 }
 0x27a   : > { %v1711_v1 = vadd.f32 %v2146_v17, %v1682_v57 }
 0x27c   : > { %1787 = vperm.xlu1 %2140, %v1711_v1  }
 0x281   : > { %v1684_v22 = vpop.xlane.xlu1 %1683 }
 0x282   : > { %v1712_v44 = vadd.f32 %v2146_v17, %v1684_v22 }
 0x284   : > { %1792 = vperm.xlu2 %2141, %v1712_v44  }
 0x289   : > { %v1686_v18 = vpop.xlane.xlu2 %1685 }
 0x28a   : > { %v1713_v49 = vadd.f32 %v2146_v17, %v1686_v18 }
 0x28c   : > { %1797 = vperm.xlu1 %2140, %v1713_v49  }
 0x291   : > { %v1688_v10 = vpop.xlane.xlu0 %1687 }
 0x292   : > { %v1714_v42 = vadd.f32 %v2146_v17, %v1688_v10 }
 0x294   : > { %1802 = vperm.xlu0 %2142, %v1714_v42  }
 0x299   : > { %v1690_v63 = vpop.xlane.xlu1 %1689 }
 0x29a   : > { %v1715_v37 = vadd.f32 %v2146_v17, %v1690_v63 }
 0x29c   : > { %1807 = vperm.xlu2 %2141, %v1715_v37  }
 0x2a1   : > { %v1692_v32 = vpop.xlane.xlu2 %1691 }
 0x2a2   : > { %v1716_v14 = vadd.f32 %v2146_v17, %v1692_v32 }
 0x2a4   : > { %1812 = vperm.xlu1 %2140, %v1716_v14  }
 0x2a9   : > { %v1694_v36 = vpop.xlane.xlu0 %1693 }
 0x2aa   : > { %v1717_v45 = vadd.f32 %v2146_v17, %v1694_v36 }
 0x2ac   : > { %1817 = vperm.xlu0 %2142, %v1717_v45  }
 0x2b1   : > { %v1696_v16 = vpop.xlane.xlu1 %1695 }
 0x2b2   : > { %v1718_v15 = vadd.f32 %v2146_v17, %v1696_v16 }
 0x2b4   : > { %1822 = vperm.xlu2 %2141, %v1718_v15  }
 0x2b9   : > { %v1698_v50 = vpop.xlane.xlu2 %1697 }
 0x2ba   : > { %v1719_v25 = vadd.f32 %v2146_v17, %v1698_v50 }
 0x2bc   : > { %1827 = vperm.xlu1 %2140, %v1719_v25  }
 0x2c1   : > { %v1763_v33 = vpop.permute.xlu2 %1762  ;;  %v1700_v60 = vpop.xlane.xlu0 %1699 }
 0x2c2   : > { %v1836_v61 = vmul.f32 %v1763_v33, %v3451_v34  ;;  %v1720_v39 = vadd.f32 %v2146_v17, %v1700_v60 }
 0x2c4   : > { %1853 = vst.msk [vmem:[%s3583_s16 + $0x8] sm:$0xff] %vm1851_vm11, %v1836_v61  ;;  %1832 = vperm.xlu0 %2142, %v1720_v39  }
 0x2c9   : > { %v1758_v53 = vpop.permute.xlu1 %1757  ;;  %v1773_v4 = vpop.permute.xlu2 %1772 }
 0x2ca   : > { %v1835_v23 = vmul.f32 %v1758_v53, %v3417_v62  ;;  %v1838_v29 = vmul.f32 %v1773_v4, %v3455_v56 }
 0x2cc   : > { %1852 = vst.msk [vmem:[%s3583_s16] sm:$0xff] %vm1851_vm11, %v1835_v23 }
 0x2cd   : > { %1855 = vst.msk [vmem:[%s3583_s16 + $0x18] sm:$0xff] %vm1851_vm11, %v1838_v29 }
 0x2d1   : > { %v1783_v6 = vpop.permute.xlu2 %1782 }
 0x2d2   : > { %v1840_v34 = vmul.f32 %v1783_v6, %v3476_v26 }
 0x2d4   : > { %1857 = vst.msk [vmem:[%s3583_s16 + $0x28] sm:$0xff] %vm1851_vm11, %v1840_v34  ;;  %v1768_v21 = vpop.permute.xlu0 %1767 }
 0x2d5   : > { %v1837_v0 = vmul.f32 %v1768_v21, %v3421_v28 }
 0x2d7   : > { %1854 = vst.msk [vmem:[%s3583_s16 + $0x10] sm:$0xff] %vm1851_vm11, %v1837_v0 }
 0x2de   : > { %v1778_v62 = vpop.permute.xlu1 %1777  ;;  %v1793_v19 = vpop.permute.xlu2 %1792 }
 0x2df   : > { %v1839_v56 = vmul.f32 %v1778_v62, %v3460_v2  ;;  %v1842_v41 = vmul.f32 %v1793_v19, %v3485_v7 }
 0x2e1   : > { %1856 = vst.msk [vmem:[%s3583_s16 + $0x20] sm:$0xff] %vm1851_vm11, %v1839_v56 }
 0x2e2   : > { %1859 = vst.msk [vmem:[%s3583_s16 + $0x38] sm:$0xff] %vm1851_vm11, %v1842_v41 }
 0x2ee   : > { %v1788_v26 = vpop.permute.xlu1 %1787 }
 0x2ef   : > { %v1841_v47 = vmul.f32 %v1788_v26, %v3480_v13 }
 0x2f1   : > { %1858 = vst.msk [vmem:[%s3583_s16 + $0x30] sm:$0xff] %vm1851_vm11, %v1841_v47 }
 0x2f6   : > { %v1808_v28 = vpop.permute.xlu2 %1807 }
 0x2f7   : > { %v1845_v59 = vmul.f32 %v1808_v28, %v3511_v46 }
 0x2f9   : > { %1862 = vst.msk [vmem:[%s3583_s16 + $0x50] sm:$0xff] %vm1851_vm11, %v1845_v59 }
 0x2fe   : > { %v1798_v2 = vpop.permute.xlu1 %1797 }
 0x2ff   : > { %v1843_v7 = vmul.f32 %v1798_v2, %v3502_v3 }
 0x301   : > { %1860 = vst.msk [vmem:[%s3583_s16 + $0x40] sm:$0xff] %vm1851_vm11, %v1843_v7 }
 0x306   : > { %v1803_v5 = vpop.permute.xlu0 %1802 }
 0x307   : > { %v1844_v40 = vmul.f32 %v1803_v5, %v3506_v8 }
 0x309   : > { %1861 = vst.msk [vmem:[%s3583_s16 + $0x48] sm:$0xff] %vm1851_vm11, %v1844_v40 }
 0x30e   : > { %v1823_v13 = vpop.permute.xlu2 %1822 }
 0x30f   : > { %v1848_v17 = vmul.f32 %v1823_v13, %v3537_v35 }
 0x311   : > { %1865 = vst.msk [vmem:[%s3583_s16 + $0x68] sm:$0xff] %vm1851_vm11, %v1848_v17 }
 0x316   : > { %v1813_v46 = vpop.permute.xlu1 %1812 }
 0x317   : > { %v1846_v31 = vmul.f32 %v1813_v46, %v3528_v24 }
 0x319   : > { %1863 = vst.msk [vmem:[%s3583_s16 + $0x58] sm:$0xff] %vm1851_vm11, %v1846_v31 }
 0x31e   : > { %v1818_v3 = vpop.permute.xlu0 %1817 }
 0x31f   : > { %v1847_v48 = vmul.f32 %v1818_v3, %v3532_v55 }
 0x321   : > { %1864 = vst.msk [vmem:[%s3583_s16 + $0x60] sm:$0xff] %vm1851_vm11, %v1847_v48 }
 0x32e   : > { %v1828_v9 = vpop.permute.xlu1 %1827 }
 0x32f   : > { %v1849_v8 = vmul.f32 %v1828_v9, %v3554_v43 }
 0x331   : > { %1866 = vst.msk [vmem:[%s3583_s16 + $0x70] sm:$0xff] %vm1851_vm11, %v1849_v8 }
 0x336   : > { %v1833_v58 = vpop.permute.xlu0 %1832 }
 0x337   : > { %v1850_v35 = vmul.f32 %v1833_v58, %v3558_v27 }
 0x339   : > { %1867 = vst.msk [vmem:[%s3583_s16 + $0x78] sm:$0xff] %vm1851_vm11, %v1850_v35 }
 0x33a PF: > { %s3671_s8 = sld [smem:[#allocation15_spill]]  ;;  %p25_p4 = scmp.ge.s32.totalorder %s2580_s18, 4  }
 0x33b   : > { %s3672_s11 = smov %s2446_s12  ;;  %s3673_s12 = smov %s2450_s13 }
 0x33c   : > { %s3675_s14 = smov %s2580_s18  ;;  %27 = sbr.rel (!%p25_p4) target bundleno = 10 (0xa), region = 121 }
 0x340   : > { %s3674_s13 = smov %s3671_s8 }
 0x341   :  { %1890 = vsyncpa [#allocation4], 1 }
 0x342   :  { %1892 = vsyncpa [#allocation4 + $0x1], 1 }
 0x343   :  { %1893 = vsyncpa [#allocation6], 1 }
 0x344   :  { %1895 = vsyncpa [#allocation6 + $0x1], 1 }
 0x345   :  { %1896 = vsyncpa [#allocation9], 1 }

</bundles_post_ra>
